<compile_context>
chip_gen: v7x
topology: tpu7x:2x2x1
jax: 0.10.0
libtpu: 0.0.40
codegen_flags: <defaults>
</compile_context>

<pallas_src>
import functools

import jax
import jax.numpy as jnp
from jax.experimental import pallas as pl
from jax.experimental.pallas import tpu as pltpu

F32 = jnp.float32
MXU_DTYPE = jnp.bfloat16            # MXU operand dtype; accumulation stays f32.
VMEM = pl.BlockSpec(memory_space=pltpu.MemorySpace.VMEM)


def _mm(a, b):
    """MXU matmul: bf16 operands, f32 accumulation."""
    return jnp.dot(a.astype(MXU_DTYPE), b.astype(MXU_DTYPE), preferred_element_type=F32)


# ----------------------------------------------------------------------------
# Single fused kernel: entity encoder + metapath GNN stacks + metapath attention
# + prediction head.  Everything stays VMEM/vreg resident.
# ----------------------------------------------------------------------------
def _han_fused_kernel(*refs, sum_layer, sub_layer, nmp, nreg, n_extra, edim, hidden):
    it = iter(refs)
    e0_ref = next(it)          # (ne_pad, edim)
    a_ref = next(it)           # (ne_pad, ne_pad)
    rgcn_w_ref = next(it)      # (sum_layer, edim, 2*edim)  [Wroot | Wrel]
    rgcn_b_ref = next(it)      # (sum_layer, 1, edim)
    sel_ref = next(it)         # (nmp, n_pad, ne_pad) one-hot gather
    ag_ref = next(it)          # (nmp, n_pad, n_pad)  row-normalized adjacency
    if sub_layer > 1:
        han_w_mid_ref = next(it)   # (nmp*(sub_layer-1), edim, 2*edim)
        han_b_mid_ref = next(it)   # (nmp*(sub_layer-1), 1, edim)
    han_w_last_ref = next(it)      # (nmp, edim, 2*hidden)
    han_b_last_ref = next(it)      # (nmp, 1, hidden)
    mp_ref = next(it)          # (nmp, mp_dim)
    qw_ref = next(it)          # (mp_dim, hidden)
    qb_ref = next(it)          # (1, hidden)
    pw_ref = next(it)          # (hidden, edim)
    pb_ref = next(it)          # (1, edim)
    if n_extra > 0:
        extra_ref = next(it)   # (n_extra, nreg, edim)
        saw1_ref = next(it)    # (edim, sa_hidden)
        sab1_ref = next(it)    # (1, sa_hidden)
        saw2_ref = next(it)    # (1, sa_hidden)
    rw1_ref = next(it)         # (1, edim)
    rw2_ref = next(it)         # (1, edim)
    rb_ref = next(it)          # (1, 1)
    o_ref = refs[-1]           # (nreg, 1)

    # ---- entity encoder: sum_layer x (RGCN -> tanh), statically unrolled ---------
    x = e0_ref[...]                                        # (ne_pad, edim) f32
    a = a_ref[...]                                         # (ne_pad, ne_pad) f32
    for l in range(sum_layer):
        xw = _mm(x, rgcn_w_ref[l])                         # (ne_pad, 2*edim) = [x@Wroot | x@Wrel]
        agg = _mm(a, xw[:, edim:])                         # mean-aggregated messages
        x = jnp.tanh(xw[:, :edim] + agg + rgcn_b_ref[l])
    E = x                                                  # (ne_pad, edim), stays resident

    # ---- per-metapath RGCN stacks: relu, static loop over metapaths --------------
    sem_embs = []
    for i in range(nmp):
        y = _mm(sel_ref[i], E)                             # in-kernel gather E[eids]
        ag = ag_ref[i]
        for j in range(sub_layer):
            if j < sub_layer - 1:
                w = han_w_mid_ref[i * (sub_layer - 1) + j]
                b = han_b_mid_ref[i * (sub_layer - 1) + j]
                dout = edim
            else:
                w = han_w_last_ref[i]
                b = han_b_last_ref[i]
                dout = hidden
            yw = _mm(y, w)                                 # (n_pad, 2*dout)
            agg = _mm(ag, yw[:, dout:])
            y = jnp.maximum(yw[:, :dout] + agg + b, 0.0)
        sem_embs.append(y[:nreg, :])                       # (nreg, hidden); requires n_i >= nreg

    # ---- metapath attention (query projection fused, softmax over metapaths) -----
    q = _mm(mp_ref[...], qw_ref[...]) + qb_ref[...]        # (nmp, hidden)
    inv_sqrt_h = 1.0 / float(hidden) ** 0.5
    scores = [jnp.sum(q[i:i + 1, :] * sem_embs[i], axis=-1, keepdims=True) * inv_sqrt_h
              for i in range(nmp)]                         # each (nreg, 1)
    m = scores[0]
    for s in scores[1:]:
        m = jnp.maximum(m, s)
    exps = [jnp.exp(s - m) for s in scores]
    den = exps[0]
    for e in exps[1:]:
        den = den + e
    h = (exps[0] / den) * sem_embs[0]
    for e, y in zip(exps[1:], sem_embs[1:]):
        h = h + (e / den) * y                              # (nreg, hidden)

    # ---- prediction head ----------------------------------------------------------
    E_reg = _mm(h, pw_ref[...]) + pb_ref[...]              # (nreg, edim)

    if n_extra > 0:
        z_list = [E_reg] + [extra_ref[t] for t in range(n_extra)]
        z_all = jnp.concatenate(z_list, axis=0)            # ((1+n_extra)*nreg, edim)
        hh = jnp.tanh(_mm(z_all, saw1_ref[...]) + sab1_ref[...])   # one stacked MXU pass
        wsc = jnp.sum(hh * saw2_ref[...], axis=-1, keepdims=True)  # (T*nreg, 1) lane reduction
        wms = [jnp.mean(wsc[t * nreg:(t + 1) * nreg], axis=0, keepdims=True)
               for t in range(n_extra + 1)]                # per-task mean over regions, (1,1)
        wmax = wms[0]
        for w_ in wms[1:]:
            wmax = jnp.maximum(wmax, w_)
        ez = [jnp.exp(w_ - wmax) for w_ in wms]
        dz = ez[0]
        for e_ in ez[1:]:
            dz = dz + e_
        acc = (ez[0] / dz) * z_list[0]                     # softmax over tasks
        for e_, z_ in zip(ez[1:], z_list[1:]):
            acc = acc + (e_ / dz) * z_
        E_reg = acc                                        # (nreg, edim)

    E_kg = E[:nreg, :]                                     # (nreg, edim)
    # edge_regressor on concat([E_reg, E_kg]) as two VPU lane reductions (no (M,1) matmuls)
    pred = (jnp.sum(E_reg * rw1_ref[...], axis=-1, keepdims=True)
            + jnp.sum(E_kg * rw2_ref[...], axis=-1, keepdims=True)
            + rb_ref[...])
    o_ref[...] = pred                                      # (nreg, 1)


def han_forward(packed, cfg):
    """Single fused pallas_call. `packed` comes from prepare_inputs (done once)."""
    sub_layer = cfg["sub_layer"]
    n_extra = 0 if packed["extra"] is None else packed["extra"].shape[0]

    args = [packed["E0"], packed["A"], packed["rgcn_w"], packed["rgcn_b"],
            packed["sel"], packed["ag"]]
    if sub_layer > 1:
        args += [packed["han_w_mid"], packed["han_b_mid"]]
    args += [packed["han_w_last"], packed["han_b_last"],
             packed["metapath_emb"], packed["q_W"], packed["q_b"],
             packed["pred_W"], packed["pred_b"]]
    if n_extra > 0:
        args += [packed["extra"], packed["sa_W1"], packed["sa_b1"], packed["sa_w2_row"]]
    args += [packed["reg_w1"], packed["reg_w2"], packed["reg_b"]]

    kernel = functools.partial(
        _han_fused_kernel,
        sum_layer=cfg["sum_layer"], sub_layer=sub_layer, nmp=cfg["nmp"],
        nreg=cfg["nreg"], n_extra=n_extra, edim=cfg["edim"], hidden=cfg["hidden"])

    return pl.pallas_call(
        kernel,
        out_shape=jax.ShapeDtypeStruct((cfg["nreg"], 1), F32),
        in_specs=[VMEM] * len(args),
        out_specs=VMEM,
    )(*args)


# ----------------------------------------------------------------------------
# One-time host-side preparation (hoisted out of the per-forward path):
# dense adjacencies, one-hot gathers, padding, weight concat / transposes.
# ----------------------------------------------------------------------------
def build_norm_adj(edge_index, n):
    """Dense row-normalized adjacency (mean aggregation), messages src -> dst."""
    src, dst = edge_index[0], edge_index[1]
    a = jnp.zeros((n, n), F32).at[dst, src].add(1.0)
    deg = jnp.sum(a, axis=1, keepdims=True)
    return a / jnp.maximum(deg, 1.0)


def _round_up(x, m):
    return -(-x // m) * m


def prepare_inputs(params, cfg, gs, edge_index, metapath_emb, all_tasks_emb):
    ne, edim, hidden = cfg["ne"], cfg["edim"], cfg["hidden"]
    nmp, nreg, sub_layer = cfg["nmp"], cfg["nreg"], cfg["sub_layer"]

    ne_pad = _round_up(ne, 8)
    A = build_norm_adj(edge_index, ne)
    A_pad = jnp.zeros((ne_pad, ne_pad), F32).at[:ne, :ne].set(A)
    E0_pad = jnp.zeros((ne_pad, edim), F32).at[:ne].set(params["E"])

    n_pad = _round_up(max(g[1].shape[0] for g in gs), 8)
    sel_list, ag_list = [], []
    for (g_edge_index, eids) in gs:
        n_i = eids.shape[0]
        assert n_i >= nreg, "reference slices E_feat[:nreg]; subgraph must contain >= nreg nodes"
        a_i = build_norm_adj(g_edge_index, n_i)
        ag_list.append(jnp.zeros((n_pad, n_pad), F32).at[:n_i, :n_i].set(a_i))
        sel_list.append(jnp.zeros((n_pad, ne_pad), F32)
                        .at[:n_i, :ne].set(jax.nn.one_hot(eids, ne, dtype=F32)))
    sel = jnp.stack(sel_list, axis=0)                      # (nmp, n_pad, ne_pad)
    ag = jnp.stack(ag_list, axis=0)                        # (nmp, n_pad, n_pad)

    # RGCN weights packed as [Wroot | Wrel] -> one MXU matmul per layer
    rgcn_w = jnp.concatenate([params["rgcn_wroot"], params["rgcn_wrel"]], axis=-1)

    # HANLayer weights: mid layers flattened over (metapath, layer); last layer per metapath
    if sub_layer > 1:
        mids_w = [jnp.concatenate([params["han_wroot"][j], params["han_wrel"][j]], axis=-1)
                  for j in range(sub_layer - 1)]           # each (nmp, edim, 2*edim)
        mids_b = [params["han_b"][j] for j in range(sub_layer - 1)]
        han_w_mid = jnp.stack(mids_w, axis=1).reshape(nmp * (sub_layer - 1), edim, 2 * edim)
        han_b_mid = jnp.stack(mids_b, axis=1).reshape(nmp * (sub_layer - 1), 1, edim)
    else:
        han_w_mid = han_b_mid = None
    han_w_last = jnp.concatenate([params["han_wroot"][-1], params["han_wrel"][-1]], axis=-1)
    han_b_last = params["han_b"][-1]

    extras = []
    for task in cfg["all_tasks"]:
        t = all_tasks_emb.get(task + "_E_reg")
        if t is not None:
            extras.append(t)
    extra = jnp.stack(extras, axis=0) if extras else None  # (n_extra, nreg, edim)

    return dict(
        E0=E0_pad, A=A_pad, rgcn_w=rgcn_w, rgcn_b=params["rgcn_b"],
        sel=sel, ag=ag,
        han_w_mid=han_w_mid, han_b_mid=han_b_mid,
        han_w_last=han_w_last, han_b_last=han_b_last,
        metapath_emb=metapath_emb, q_W=params["q_W"], q_b=params["q_b"],
        pred_W=params["pred_W"], pred_b=params["pred_b"],
        extra=extra, sa_W1=params["sa_W1"], sa_b1=params["sa_b1"],
        sa_w2_row=jnp.transpose(params["sa_W2"]),          # (1, sa_hidden)
        reg_w1=jnp.transpose(params["reg_W"][:edim, :]),   # (1, edim)
        reg_w2=jnp.transpose(params["reg_W"][edim:, :]),   # (1, edim)
        reg_b=params["reg_b"],
    )


# ----------------------------------------------------------------------------
# Deterministic parameter / input construction
# ----------------------------------------------------------------------------
def xavier(key, shape):
    fan_in, fan_out = shape[-2], shape[-1]
    std = (2.0 / (fan_in + fan_out)) ** 0.5
    return (std * jax.random.normal(key, shape)).astype(F32)


def make_params(key, cfg):
    edim, hidden = cfg["edim"], cfg["hidden"]
    keys = iter(jax.random.split(key, 64))
    p = {}
    p["E"] = xavier(next(keys), (cfg["ne"], edim))
    p["rgcn_wroot"] = jnp.stack([xavier(next(keys), (edim, edim))
                                 for _ in range(cfg["sum_layer"])], axis=0)
    p["rgcn_wrel"] = jnp.stack([xavier(next(keys), (edim, edim))
                                for _ in range(cfg["sum_layer"])], axis=0)
    p["rgcn_b"] = jnp.zeros((cfg["sum_layer"], 1, edim), F32)
    p["han_wroot"], p["han_wrel"], p["han_b"] = [], [], []
    for j in range(cfg["sub_layer"]):
        dout = edim if j < cfg["sub_layer"] - 1 else hidden
        p["han_wroot"].append(jnp.stack([xavier(next(keys), (edim, dout))
                                         for _ in range(cfg["nmp"])], axis=0))
        p["han_wrel"].append(jnp.stack([xavier(next(keys), (edim, dout))
                                        for _ in range(cfg["nmp"])], axis=0))
        p["han_b"].append(jnp.zeros((cfg["nmp"], 1, dout), F32))
    p["q_W"] = xavier(next(keys), (cfg["mp_dim"], hidden))
    p["q_b"] = jnp.zeros((1, hidden), F32)
    p["pred_W"] = xavier(next(keys), (hidden, edim))
    p["pred_b"] = jnp.zeros((1, edim), F32)
    p["sa_W1"] = xavier(next(keys), (edim, cfg["sa_hidden"]))
    p["sa_b1"] = jnp.zeros((1, cfg["sa_hidden"]), F32)
    p["sa_W2"] = xavier(next(keys), (cfg["sa_hidden"], 1))
    p["reg_W"] = xavier(next(keys), (2 * edim, 1))
    p["reg_b"] = jnp.zeros((1, 1), F32)
    return p


if __name__ == "__main__":
    cfg = dict(
        ne=12,           # entities in the full KG
        edim=32,         # embedding dim
        hidden=32,       # HANLayer output dim
        nreg=8,          # regions of interest
        nmp=2,           # number of metapaths
        sub_layer=2,     # RGCN layers per metapath in HANLayer
        sum_layer=2,     # RGCN layers on the full graph
        mp_dim=16,       # metapath embedding dim
        sa_hidden=128,   # SemanticAttention hidden size
        all_tasks=["taskA", "taskB"],
        nes=[10, 10],    # nodes per metapath subgraph
    )

    root = jax.random.PRNGKey(0)
    k_par, k_e, k_g, k_mp, k_t = jax.random.split(root, 5)
    params = make_params(k_par, cfg)

    # full-graph edge index (src row 0, dst row 1)
    edge_index = jax.random.randint(k_e, (2, 40), 0, cfg["ne"], dtype=jnp.int32)

    # per-metapath subgraphs: (edge_index, eids)
    gs = []
    gkeys = jax.random.split(k_g, 2 * cfg["nmp"])
    for i in range(cfg["nmp"]):
        n_i = cfg["nes"][i]
        ei = jax.random.randint(gkeys[2 * i], (2, 24), 0, n_i, dtype=jnp.int32)
        eids = jax.random.randint(gkeys[2 * i + 1], (n_i,), 0, cfg["ne"], dtype=jnp.int32)
        gs.append((ei, eids))

    metapath_emb = jax.random.normal(k_mp, (cfg["nmp"], cfg["mp_dim"]), dtype=F32)
    all_tasks_emb = {
        "taskA_E_reg": jax.random.normal(k_t, (cfg["nreg"], cfg["edim"]), dtype=F32),
        "taskB_E_reg": None,
    }

    # one-time preprocessing (hoisted host glue), then a single fused kernel launch
    packed = prepare_inputs(params, cfg, gs, edge_index, metapath_emb, all_tasks_emb)
    pred = han_forward(packed, cfg)
    pred = jax.block_until_ready(pred)
    assert pred.shape == (cfg["nreg"], 1) and pred.dtype == jnp.float32
    print("KERNEL_OK")
</pallas_src>

<mosaic_0001>
module attributes {stable_mosaic.version = 11 : i64} {
  func.func @_han_fused_kernel(%arg0: memref<16x32xf32, #tpu.memory_space<vmem>>, %arg1: memref<16x16xf32, #tpu.memory_space<vmem>>, %arg2: memref<2x32x64xf32, #tpu.memory_space<vmem>>, %arg3: memref<2x1x32xf32, #tpu.memory_space<vmem>>, %arg4: memref<2x16x16xf32, #tpu.memory_space<vmem>>, %arg5: memref<2x16x16xf32, #tpu.memory_space<vmem>>, %arg6: memref<2x32x64xf32, #tpu.memory_space<vmem>>, %arg7: memref<2x1x32xf32, #tpu.memory_space<vmem>>, %arg8: memref<2x32x64xf32, #tpu.memory_space<vmem>>, %arg9: memref<2x1x32xf32, #tpu.memory_space<vmem>>, %arg10: memref<2x16xf32, #tpu.memory_space<vmem>>, %arg11: memref<16x32xf32, #tpu.memory_space<vmem>>, %arg12: memref<1x32xf32, #tpu.memory_space<vmem>>, %arg13: memref<32x32xf32, #tpu.memory_space<vmem>>, %arg14: memref<1x32xf32, #tpu.memory_space<vmem>>, %arg15: memref<1x8x32xf32, #tpu.memory_space<vmem>>, %arg16: memref<32x128xf32, #tpu.memory_space<vmem>>, %arg17: memref<1x128xf32, #tpu.memory_space<vmem>>, %arg18: memref<1x128xf32, #tpu.memory_space<vmem>>, %arg19: memref<1x32xf32, #tpu.memory_space<vmem>>, %arg20: memref<1x32xf32, #tpu.memory_space<vmem>>, %arg21: memref<1x1xf32, #tpu.memory_space<vmem>>, %arg22: memref<8x1xf32, #tpu.memory_space<vmem>>) attributes {dimension_semantics = [], scalar_prefetch = 0 : i64, scratch_operands = 0 : i64, tpu.core_type = #tpu.core_type<tc>} {
    %c0 = arith.constant 0 : index
    %c0_0 = arith.constant 0 : index
    %0 = vector.load %arg0[%c0, %c0_0] : memref<16x32xf32, #tpu.memory_space<vmem>>, vector<16x32xf32>
    %c0_1 = arith.constant 0 : index
    %c0_2 = arith.constant 0 : index
    %1 = vector.load %arg1[%c0_1, %c0_2] : memref<16x16xf32, #tpu.memory_space<vmem>>, vector<16x16xf32>
    %c0_3 = arith.constant 0 : index
    %c0_4 = arith.constant 0 : index
    %c0_5 = arith.constant 0 : index
    %2 = vector.load %arg2[%c0_3, %c0_4, %c0_5] : memref<2x32x64xf32, #tpu.memory_space<vmem>>, vector<1x32x64xf32>
    %3 = vector.shape_cast %2 : vector<1x32x64xf32> to vector<32x64xf32>
    %4 = arith.truncf %0 : vector<16x32xf32> to vector<16x32xbf16>
    %5 = arith.truncf %3 : vector<32x64xf32> to vector<32x64xbf16>
    %cst = arith.constant dense<0.000000e+00> : vector<16x64xf32>
    %6 = tpu.matmul %4, %5, %cst {dimension_numbers = #tpu.dot_dimension_numbers<[1], [0], [0], [1], [0, 0, 1, 1], [], []>} : vector<16x32xbf16>, vector<32x64xbf16>, vector<16x64xf32> -> vector<16x64xf32>
    %7 = vector.extract_strided_slice %6 {offsets = [0, 32], sizes = [16, 32], strides = [1, 1]} : vector<16x64xf32> to vector<16x32xf32>
    %8 = arith.truncf %1 : vector<16x16xf32> to vector<16x16xbf16>
    %9 = arith.truncf %7 : vector<16x32xf32> to vector<16x32xbf16>
    %cst_6 = arith.constant dense<0.000000e+00> : vector<16x32xf32>
    %10 = tpu.matmul %8, %9, %cst_6 {dimension_numbers = #tpu.dot_dimension_numbers<[1], [0], [0], [1], [0, 0, 1, 1], [], []>} : vector<16x16xbf16>, vector<16x32xbf16>, vector<16x32xf32> -> vector<16x32xf32>
    %11 = vector.extract_strided_slice %6 {offsets = [0, 0], sizes = [16, 32], strides = [1, 1]} : vector<16x64xf32> to vector<16x32xf32>
    %12 = arith.addf %11, %10 : vector<16x32xf32>
    %c0_7 = arith.constant 0 : index
    %c0_8 = arith.constant 0 : index
    %c0_9 = arith.constant 0 : index
    %13 = vector.load %arg3[%c0_7, %c0_8, %c0_9] : memref<2x1x32xf32, #tpu.memory_space<vmem>>, vector<1x1x32xf32>
    %14 = vector.shape_cast %13 : vector<1x1x32xf32> to vector<1x32xf32>
    %15 = vector.broadcast %14 : vector<1x32xf32> to vector<16x32xf32>
    %16 = arith.addf %12, %15 : vector<16x32xf32>
    %17 = math.tanh %16 : vector<16x32xf32>
    %c1 = arith.constant 1 : index
    %c0_10 = arith.constant 0 : index
    %c0_11 = arith.constant 0 : index
    %18 = vector.load %arg2[%c1, %c0_10, %c0_11] : memref<2x32x64xf32, #tpu.memory_space<vmem>>, vector<1x32x64xf32>
    %19 = vector.shape_cast %18 : vector<1x32x64xf32> to vector<32x64xf32>
    %20 = arith.truncf %17 : vector<16x32xf32> to vector<16x32xbf16>
    %21 = arith.truncf %19 : vector<32x64xf32> to vector<32x64xbf16>
    %cst_12 = arith.constant dense<0.000000e+00> : vector<16x64xf32>
    %22 = tpu.matmul %20, %21, %cst_12 {dimension_numbers = #tpu.dot_dimension_numbers<[1], [0], [0], [1], [0, 0, 1, 1], [], []>} : vector<16x32xbf16>, vector<32x64xbf16>, vector<16x64xf32> -> vector<16x64xf32>
    %23 = vector.extract_strided_slice %22 {offsets = [0, 32], sizes = [16, 32], strides = [1, 1]} : vector<16x64xf32> to vector<16x32xf32>
    %24 = arith.truncf %1 : vector<16x16xf32> to vector<16x16xbf16>
    %25 = arith.truncf %23 : vector<16x32xf32> to vector<16x32xbf16>
    %cst_13 = arith.constant dense<0.000000e+00> : vector<16x32xf32>
    %26 = tpu.matmul %24, %25, %cst_13 {dimension_numbers = #tpu.dot_dimension_numbers<[1], [0], [0], [1], [0, 0, 1, 1], [], []>} : vector<16x16xbf16>, vector<16x32xbf16>, vector<16x32xf32> -> vector<16x32xf32>
    %27 = vector.extract_strided_slice %22 {offsets = [0, 0], sizes = [16, 32], strides = [1, 1]} : vector<16x64xf32> to vector<16x32xf32>
    %28 = arith.addf %27, %26 : vector<16x32xf32>
    %c1_14 = arith.constant 1 : index
    %c0_15 = arith.constant 0 : index
    %c0_16 = arith.constant 0 : index
    %29 = vector.load %arg3[%c1_14, %c0_15, %c0_16] : memref<2x1x32xf32, #tpu.memory_space<vmem>>, vector<1x1x32xf32>
    %30 = vector.shape_cast %29 : vector<1x1x32xf32> to vector<1x32xf32>
    %31 = vector.broadcast %30 : vector<1x32xf32> to vector<16x32xf32>
    %32 = arith.addf %28, %31 : vector<16x32xf32>
    %33 = math.tanh %32 : vector<16x32xf32>
    %c0_17 = arith.constant 0 : index
    %c0_18 = arith.constant 0 : index
    %c0_19 = arith.constant 0 : index
    %34 = vector.load %arg4[%c0_17, %c0_18, %c0_19] : memref<2x16x16xf32, #tpu.memory_space<vmem>>, vector<1x16x16xf32>
    %35 = vector.shape_cast %34 : vector<1x16x16xf32> to vector<16x16xf32>
    %36 = arith.truncf %35 : vector<16x16xf32> to vector<16x16xbf16>
    %37 = arith.truncf %33 : vector<16x32xf32> to vector<16x32xbf16>
    %cst_20 = arith.constant dense<0.000000e+00> : vector<16x32xf32>
    %38 = tpu.matmul %36, %37, %cst_20 {dimension_numbers = #tpu.dot_dimension_numbers<[1], [0], [0], [1], [0, 0, 1, 1], [], []>} : vector<16x16xbf16>, vector<16x32xbf16>, vector<16x32xf32> -> vector<16x32xf32>
    %c0_21 = arith.constant 0 : index
    %c0_22 = arith.constant 0 : index
    %c0_23 = arith.constant 0 : index
    %39 = vector.load %arg5[%c0_21, %c0_22, %c0_23] : memref<2x16x16xf32, #tpu.memory_space<vmem>>, vector<1x16x16xf32>
    %40 = vector.shape_cast %39 : vector<1x16x16xf32> to vector<16x16xf32>
    %c0_24 = arith.constant 0 : index
    %c0_25 = arith.constant 0 : index
    %c0_26 = arith.constant 0 : index
    %41 = vector.load %arg6[%c0_24, %c0_25, %c0_26] : memref<2x32x64xf32, #tpu.memory_space<vmem>>, vector<1x32x64xf32>
    %42 = vector.shape_cast %41 : vector<1x32x64xf32> to vector<32x64xf32>
    %c0_27 = arith.constant 0 : index
    %c0_28 = arith.constant 0 : index
    %c0_29 = arith.constant 0 : index
    %43 = vector.load %arg7[%c0_27, %c0_28, %c0_29] : memref<2x1x32xf32, #tpu.memory_space<vmem>>, vector<1x1x32xf32>
    %44 = vector.shape_cast %43 : vector<1x1x32xf32> to vector<1x32xf32>
    %45 = arith.truncf %38 : vector<16x32xf32> to vector<16x32xbf16>
    %46 = arith.truncf %42 : vector<32x64xf32> to vector<32x64xbf16>
    %cst_30 = arith.constant dense<0.000000e+00> : vector<16x64xf32>
    %47 = tpu.matmul %45, %46, %cst_30 {dimension_numbers = #tpu.dot_dimension_numbers<[1], [0], [0], [1], [0, 0, 1, 1], [], []>} : vector<16x32xbf16>, vector<32x64xbf16>, vector<16x64xf32> -> vector<16x64xf32>
    %48 = vector.extract_strided_slice %47 {offsets = [0, 32], sizes = [16, 32], strides = [1, 1]} : vector<16x64xf32> to vector<16x32xf32>
    %49 = arith.truncf %40 : vector<16x16xf32> to vector<16x16xbf16>
    %50 = arith.truncf %48 : vector<16x32xf32> to vector<16x32xbf16>
    %cst_31 = arith.constant dense<0.000000e+00> : vector<16x32xf32>
    %51 = tpu.matmul %49, %50, %cst_31 {dimension_numbers = #tpu.dot_dimension_numbers<[1], [0], [0], [1], [0, 0, 1, 1], [], []>} : vector<16x16xbf16>, vector<16x32xbf16>, vector<16x32xf32> -> vector<16x32xf32>
    %52 = vector.extract_strided_slice %47 {offsets = [0, 0], sizes = [16, 32], strides = [1, 1]} : vector<16x64xf32> to vector<16x32xf32>
    %53 = arith.addf %52, %51 : vector<16x32xf32>
    %54 = vector.broadcast %44 : vector<1x32xf32> to vector<16x32xf32>
    %55 = arith.addf %53, %54 : vector<16x32xf32>
    %cst_32 = arith.constant 0.000000e+00 : f32
    %56 = vector.broadcast %cst_32 : f32 to vector<16x32xf32>
    %57 = arith.maximumf %55, %56 : vector<16x32xf32>
    %c0_33 = arith.constant 0 : index
    %c0_34 = arith.constant 0 : index
    %c0_35 = arith.constant 0 : index
    %58 = vector.load %arg8[%c0_33, %c0_34, %c0_35] : memref<2x32x64xf32, #tpu.memory_space<vmem>>, vector<1x32x64xf32>
    %59 = vector.shape_cast %58 : vector<1x32x64xf32> to vector<32x64xf32>
    %c0_36 = arith.constant 0 : index
    %c0_37 = arith.constant 0 : index
    %c0_38 = arith.constant 0 : index
    %60 = vector.load %arg9[%c0_36, %c0_37, %c0_38] : memref<2x1x32xf32, #tpu.memory_space<vmem>>, vector<1x1x32xf32>
    %61 = vector.shape_cast %60 : vector<1x1x32xf32> to vector<1x32xf32>
    %62 = arith.truncf %57 : vector<16x32xf32> to vector<16x32xbf16>
    %63 = arith.truncf %59 : vector<32x64xf32> to vector<32x64xbf16>
    %cst_39 = arith.constant dense<0.000000e+00> : vector<16x64xf32>
    %64 = tpu.matmul %62, %63, %cst_39 {dimension_numbers = #tpu.dot_dimension_numbers<[1], [0], [0], [1], [0, 0, 1, 1], [], []>} : vector<16x32xbf16>, vector<32x64xbf16>, vector<16x64xf32> -> vector<16x64xf32>
    %65 = vector.extract_strided_slice %64 {offsets = [0, 32], sizes = [16, 32], strides = [1, 1]} : vector<16x64xf32> to vector<16x32xf32>
    %66 = arith.truncf %40 : vector<16x16xf32> to vector<16x16xbf16>
    %67 = arith.truncf %65 : vector<16x32xf32> to vector<16x32xbf16>
    %cst_40 = arith.constant dense<0.000000e+00> : vector<16x32xf32>
    %68 = tpu.matmul %66, %67, %cst_40 {dimension_numbers = #tpu.dot_dimension_numbers<[1], [0], [0], [1], [0, 0, 1, 1], [], []>} : vector<16x16xbf16>, vector<16x32xbf16>, vector<16x32xf32> -> vector<16x32xf32>
    %69 = vector.extract_strided_slice %64 {offsets = [0, 0], sizes = [16, 32], strides = [1, 1]} : vector<16x64xf32> to vector<16x32xf32>
    %70 = arith.addf %69, %68 : vector<16x32xf32>
    %71 = vector.broadcast %61 : vector<1x32xf32> to vector<16x32xf32>
    %72 = arith.addf %70, %71 : vector<16x32xf32>
    %cst_41 = arith.constant 0.000000e+00 : f32
    %73 = vector.broadcast %cst_41 : f32 to vector<16x32xf32>
    %74 = arith.maximumf %72, %73 : vector<16x32xf32>
    %75 = vector.extract_strided_slice %74 {offsets = [0, 0], sizes = [8, 32], strides = [1, 1]} : vector<16x32xf32> to vector<8x32xf32>
    %c1_42 = arith.constant 1 : index
    %c0_43 = arith.constant 0 : index
    %c0_44 = arith.constant 0 : index
    %76 = vector.load %arg4[%c1_42, %c0_43, %c0_44] : memref<2x16x16xf32, #tpu.memory_space<vmem>>, vector<1x16x16xf32>
    %77 = vector.shape_cast %76 : vector<1x16x16xf32> to vector<16x16xf32>
    %78 = arith.truncf %77 : vector<16x16xf32> to vector<16x16xbf16>
    %79 = arith.truncf %33 : vector<16x32xf32> to vector<16x32xbf16>
    %cst_45 = arith.constant dense<0.000000e+00> : vector<16x32xf32>
    %80 = tpu.matmul %78, %79, %cst_45 {dimension_numbers = #tpu.dot_dimension_numbers<[1], [0], [0], [1], [0, 0, 1, 1], [], []>} : vector<16x16xbf16>, vector<16x32xbf16>, vector<16x32xf32> -> vector<16x32xf32>
    %c1_46 = arith.constant 1 : index
    %c0_47 = arith.constant 0 : index
    %c0_48 = arith.constant 0 : index
    %81 = vector.load %arg5[%c1_46, %c0_47, %c0_48] : memref<2x16x16xf32, #tpu.memory_space<vmem>>, vector<1x16x16xf32>
    %82 = vector.shape_cast %81 : vector<1x16x16xf32> to vector<16x16xf32>
    %c1_49 = arith.constant 1 : index
    %c0_50 = arith.constant 0 : index
    %c0_51 = arith.constant 0 : index
    %83 = vector.load %arg6[%c1_49, %c0_50, %c0_51] : memref<2x32x64xf32, #tpu.memory_space<vmem>>, vector<1x32x64xf32>
    %84 = vector.shape_cast %83 : vector<1x32x64xf32> to vector<32x64xf32>
    %c1_52 = arith.constant 1 : index
    %c0_53 = arith.constant 0 : index
    %c0_54 = arith.constant 0 : index
    %85 = vector.load %arg7[%c1_52, %c0_53, %c0_54] : memref<2x1x32xf32, #tpu.memory_space<vmem>>, vector<1x1x32xf32>
    %86 = vector.shape_cast %85 : vector<1x1x32xf32> to vector<1x32xf32>
    %87 = arith.truncf %80 : vector<16x32xf32> to vector<16x32xbf16>
    %88 = arith.truncf %84 : vector<32x64xf32> to vector<32x64xbf16>
    %cst_55 = arith.constant dense<0.000000e+00> : vector<16x64xf32>
    %89 = tpu.matmul %87, %88, %cst_55 {dimension_numbers = #tpu.dot_dimension_numbers<[1], [0], [0], [1], [0, 0, 1, 1], [], []>} : vector<16x32xbf16>, vector<32x64xbf16>, vector<16x64xf32> -> vector<16x64xf32>
    %90 = vector.extract_strided_slice %89 {offsets = [0, 32], sizes = [16, 32], strides = [1, 1]} : vector<16x64xf32> to vector<16x32xf32>
    %91 = arith.truncf %82 : vector<16x16xf32> to vector<16x16xbf16>
    %92 = arith.truncf %90 : vector<16x32xf32> to vector<16x32xbf16>
    %cst_56 = arith.constant dense<0.000000e+00> : vector<16x32xf32>
    %93 = tpu.matmul %91, %92, %cst_56 {dimension_numbers = #tpu.dot_dimension_numbers<[1], [0], [0], [1], [0, 0, 1, 1], [], []>} : vector<16x16xbf16>, vector<16x32xbf16>, vector<16x32xf32> -> vector<16x32xf32>
    %94 = vector.extract_strided_slice %89 {offsets = [0, 0], sizes = [16, 32], strides = [1, 1]} : vector<16x64xf32> to vector<16x32xf32>
    %95 = arith.addf %94, %93 : vector<16x32xf32>
    %96 = vector.broadcast %86 : vector<1x32xf32> to vector<16x32xf32>
    %97 = arith.addf %95, %96 : vector<16x32xf32>
    %cst_57 = arith.constant 0.000000e+00 : f32
    %98 = vector.broadcast %cst_57 : f32 to vector<16x32xf32>
    %99 = arith.maximumf %97, %98 : vector<16x32xf32>
    %c1_58 = arith.constant 1 : index
    %c0_59 = arith.constant 0 : index
    %c0_60 = arith.constant 0 : index
    %100 = vector.load %arg8[%c1_58, %c0_59, %c0_60] : memref<2x32x64xf32, #tpu.memory_space<vmem>>, vector<1x32x64xf32>
    %101 = vector.shape_cast %100 : vector<1x32x64xf32> to vector<32x64xf32>
    %c1_61 = arith.constant 1 : index
    %c0_62 = arith.constant 0 : index
    %c0_63 = arith.constant 0 : index
    %102 = vector.load %arg9[%c1_61, %c0_62, %c0_63] : memref<2x1x32xf32, #tpu.memory_space<vmem>>, vector<1x1x32xf32>
    %103 = vector.shape_cast %102 : vector<1x1x32xf32> to vector<1x32xf32>
    %104 = arith.truncf %99 : vector<16x32xf32> to vector<16x32xbf16>
    %105 = arith.truncf %101 : vector<32x64xf32> to vector<32x64xbf16>
    %cst_64 = arith.constant dense<0.000000e+00> : vector<16x64xf32>
    %106 = tpu.matmul %104, %105, %cst_64 {dimension_numbers = #tpu.dot_dimension_numbers<[1], [0], [0], [1], [0, 0, 1, 1], [], []>} : vector<16x32xbf16>, vector<32x64xbf16>, vector<16x64xf32> -> vector<16x64xf32>
    %107 = vector.extract_strided_slice %106 {offsets = [0, 32], sizes = [16, 32], strides = [1, 1]} : vector<16x64xf32> to vector<16x32xf32>
    %108 = arith.truncf %82 : vector<16x16xf32> to vector<16x16xbf16>
    %109 = arith.truncf %107 : vector<16x32xf32> to vector<16x32xbf16>
    %cst_65 = arith.constant dense<0.000000e+00> : vector<16x32xf32>
    %110 = tpu.matmul %108, %109, %cst_65 {dimension_numbers = #tpu.dot_dimension_numbers<[1], [0], [0], [1], [0, 0, 1, 1], [], []>} : vector<16x16xbf16>, vector<16x32xbf16>, vector<16x32xf32> -> vector<16x32xf32>
    %111 = vector.extract_strided_slice %106 {offsets = [0, 0], sizes = [16, 32], strides = [1, 1]} : vector<16x64xf32> to vector<16x32xf32>
    %112 = arith.addf %111, %110 : vector<16x32xf32>
    %113 = vector.broadcast %103 : vector<1x32xf32> to vector<16x32xf32>
    %114 = arith.addf %112, %113 : vector<16x32xf32>
    %cst_66 = arith.constant 0.000000e+00 : f32
    %115 = vector.broadcast %cst_66 : f32 to vector<16x32xf32>
    %116 = arith.maximumf %114, %115 : vector<16x32xf32>
    %117 = vector.extract_strided_slice %116 {offsets = [0, 0], sizes = [8, 32], strides = [1, 1]} : vector<16x32xf32> to vector<8x32xf32>
    %c0_67 = arith.constant 0 : index
    %c0_68 = arith.constant 0 : index
    %118 = vector.load %arg10[%c0_67, %c0_68] : memref<2x16xf32, #tpu.memory_space<vmem>>, vector<2x16xf32>
    %c0_69 = arith.constant 0 : index
    %c0_70 = arith.constant 0 : index
    %119 = vector.load %arg11[%c0_69, %c0_70] : memref<16x32xf32, #tpu.memory_space<vmem>>, vector<16x32xf32>
    %120 = arith.truncf %118 : vector<2x16xf32> to vector<2x16xbf16>
    %121 = arith.truncf %119 : vector<16x32xf32> to vector<16x32xbf16>
    %cst_71 = arith.constant dense<0.000000e+00> : vector<2x32xf32>
    %122 = tpu.matmul %120, %121, %cst_71 {dimension_numbers = #tpu.dot_dimension_numbers<[1], [0], [0], [1], [0, 0, 1, 1], [], []>} : vector<2x16xbf16>, vector<16x32xbf16>, vector<2x32xf32> -> vector<2x32xf32>
    %c0_72 = arith.constant 0 : index
    %c0_73 = arith.constant 0 : index
    %123 = vector.load %arg12[%c0_72, %c0_73] : memref<1x32xf32, #tpu.memory_space<vmem>>, vector<1x32xf32>
    %124 = vector.broadcast %123 : vector<1x32xf32> to vector<2x32xf32>
    %125 = arith.addf %122, %124 : vector<2x32xf32>
    %126 = vector.extract_strided_slice %125 {offsets = [0, 0], sizes = [1, 32], strides = [1, 1]} : vector<2x32xf32> to vector<1x32xf32>
    %127 = vector.broadcast %126 : vector<1x32xf32> to vector<8x32xf32>
    %128 = arith.mulf %127, %75 : vector<8x32xf32>
    %cst_74 = arith.constant dense<0.000000e+00> : vector<8xf32>
    %129 = vector.multi_reduction <add>, %128, %cst_74 [1] : vector<8x32xf32> to vector<8xf32>
    %130 = vector.shape_cast %129 : vector<8xf32> to vector<8x1xf32>
    %cst_75 = arith.constant 0.176776692 : f32
    %131 = vector.broadcast %cst_75 : f32 to vector<8x1xf32>
    %132 = arith.mulf %130, %131 : vector<8x1xf32>
    %133 = vector.extract_strided_slice %125 {offsets = [1, 0], sizes = [1, 32], strides = [1, 1]} : vector<2x32xf32> to vector<1x32xf32>
    %134 = vector.broadcast %133 : vector<1x32xf32> to vector<8x32xf32>
    %135 = arith.mulf %134, %117 : vector<8x32xf32>
    %cst_76 = arith.constant dense<0.000000e+00> : vector<8xf32>
    %136 = vector.multi_reduction <add>, %135, %cst_76 [1] : vector<8x32xf32> to vector<8xf32>
    %137 = vector.shape_cast %136 : vector<8xf32> to vector<8x1xf32>
    %cst_77 = arith.constant 0.176776692 : f32
    %138 = vector.broadcast %cst_77 : f32 to vector<8x1xf32>
    %139 = arith.mulf %137, %138 : vector<8x1xf32>
    %140 = arith.maximumf %132, %139 : vector<8x1xf32>
    %141 = arith.subf %132, %140 : vector<8x1xf32>
    %142 = math.exp %141 : vector<8x1xf32>
    %143 = arith.subf %139, %140 : vector<8x1xf32>
    %144 = math.exp %143 : vector<8x1xf32>
    %145 = arith.addf %142, %144 : vector<8x1xf32>
    %146 = arith.divf %142, %145 : vector<8x1xf32>
    %147 = vector.broadcast %146 : vector<8x1xf32> to vector<8x32xf32>
    %148 = arith.mulf %147, %75 : vector<8x32xf32>
    %149 = arith.divf %144, %145 : vector<8x1xf32>
    %150 = vector.broadcast %149 : vector<8x1xf32> to vector<8x32xf32>
    %151 = arith.mulf %150, %117 : vector<8x32xf32>
    %152 = arith.addf %148, %151 : vector<8x32xf32>
    %c0_78 = arith.constant 0 : index
    %c0_79 = arith.constant 0 : index
    %153 = vector.load %arg13[%c0_78, %c0_79] : memref<32x32xf32, #tpu.memory_space<vmem>>, vector<32x32xf32>
    %154 = arith.truncf %152 : vector<8x32xf32> to vector<8x32xbf16>
    %155 = arith.truncf %153 : vector<32x32xf32> to vector<32x32xbf16>
    %cst_80 = arith.constant dense<0.000000e+00> : vector<8x32xf32>
    %156 = tpu.matmul %154, %155, %cst_80 {dimension_numbers = #tpu.dot_dimension_numbers<[1], [0], [0], [1], [0, 0, 1, 1], [], []>} : vector<8x32xbf16>, vector<32x32xbf16>, vector<8x32xf32> -> vector<8x32xf32>
    %c0_81 = arith.constant 0 : index
    %c0_82 = arith.constant 0 : index
    %157 = vector.load %arg14[%c0_81, %c0_82] : memref<1x32xf32, #tpu.memory_space<vmem>>, vector<1x32xf32>
    %158 = vector.broadcast %157 : vector<1x32xf32> to vector<8x32xf32>
    %159 = arith.addf %156, %158 : vector<8x32xf32>
    %c0_83 = arith.constant 0 : index
    %c0_84 = arith.constant 0 : index
    %c0_85 = arith.constant 0 : index
    %160 = vector.load %arg15[%c0_83, %c0_84, %c0_85] : memref<1x8x32xf32, #tpu.memory_space<vmem>>, vector<1x8x32xf32>
    %161 = vector.shape_cast %160 : vector<1x8x32xf32> to vector<8x32xf32>
    %162 = tpu.concatenate %159, %161 in 0 : vector<8x32xf32>, vector<8x32xf32> -> vector<16x32xf32>
    %c0_86 = arith.constant 0 : index
    %c0_87 = arith.constant 0 : index
    %163 = vector.load %arg16[%c0_86, %c0_87] : memref<32x128xf32, #tpu.memory_space<vmem>>, vector<32x128xf32>
    %164 = arith.truncf %162 : vector<16x32xf32> to vector<16x32xbf16>
    %165 = arith.truncf %163 : vector<32x128xf32> to vector<32x128xbf16>
    %cst_88 = arith.constant dense<0.000000e+00> : vector<16x128xf32>
    %166 = tpu.matmul %164, %165, %cst_88 {dimension_numbers = #tpu.dot_dimension_numbers<[1], [0], [0], [1], [0, 0, 1, 1], [], []>} : vector<16x32xbf16>, vector<32x128xbf16>, vector<16x128xf32> -> vector<16x128xf32>
    %c0_89 = arith.constant 0 : index
    %c0_90 = arith.constant 0 : index
    %167 = vector.load %arg17[%c0_89, %c0_90] : memref<1x128xf32, #tpu.memory_space<vmem>>, vector<1x128xf32>
    %168 = vector.broadcast %167 : vector<1x128xf32> to vector<16x128xf32>
    %169 = arith.addf %166, %168 : vector<16x128xf32>
    %170 = math.tanh %169 : vector<16x128xf32>
    %c0_91 = arith.constant 0 : index
    %c0_92 = arith.constant 0 : index
    %171 = vector.load %arg18[%c0_91, %c0_92] : memref<1x128xf32, #tpu.memory_space<vmem>>, vector<1x128xf32>
    %172 = vector.broadcast %171 : vector<1x128xf32> to vector<16x128xf32>
    %173 = arith.mulf %170, %172 : vector<16x128xf32>
    %cst_93 = arith.constant dense<0.000000e+00> : vector<16xf32>
    %174 = vector.multi_reduction <add>, %173, %cst_93 [1] : vector<16x128xf32> to vector<16xf32>
    %175 = vector.shape_cast %174 : vector<16xf32> to vector<16x1xf32>
    %176 = vector.extract_strided_slice %175 {offsets = [0, 0], sizes = [8, 1], strides = [1, 1]} : vector<16x1xf32> to vector<8x1xf32>
    %cst_94 = arith.constant dense<0.000000e+00> : vector<1xf32>
    %177 = vector.multi_reduction <add>, %176, %cst_94 [0] : vector<8x1xf32> to vector<1xf32>
    %178 = vector.shape_cast %177 : vector<1xf32> to vector<1x1xf32>
    %cst_95 = arith.constant 8.000000e+00 : f32
    %179 = vector.broadcast %cst_95 : f32 to vector<1x1xf32>
    %180 = arith.divf %178, %179 : vector<1x1xf32>
    %181 = vector.extract_strided_slice %175 {offsets = [8, 0], sizes = [8, 1], strides = [1, 1]} : vector<16x1xf32> to vector<8x1xf32>
    %cst_96 = arith.constant dense<0.000000e+00> : vector<1xf32>
    %182 = vector.multi_reduction <add>, %181, %cst_96 [0] : vector<8x1xf32> to vector<1xf32>
    %183 = vector.shape_cast %182 : vector<1xf32> to vector<1x1xf32>
    %cst_97 = arith.constant 8.000000e+00 : f32
    %184 = vector.broadcast %cst_97 : f32 to vector<1x1xf32>
    %185 = arith.divf %183, %184 : vector<1x1xf32>
    %186 = arith.maximumf %180, %185 : vector<1x1xf32>
    %187 = arith.subf %180, %186 : vector<1x1xf32>
    %188 = math.exp %187 : vector<1x1xf32>
    %189 = arith.subf %185, %186 : vector<1x1xf32>
    %190 = math.exp %189 : vector<1x1xf32>
    %191 = arith.addf %188, %190 : vector<1x1xf32>
    %192 = arith.divf %188, %191 : vector<1x1xf32>
    %193 = vector.broadcast %192 : vector<1x1xf32> to vector<8x32xf32>
    %194 = arith.mulf %193, %159 : vector<8x32xf32>
    %195 = arith.divf %190, %191 : vector<1x1xf32>
    %196 = vector.broadcast %195 : vector<1x1xf32> to vector<8x32xf32>
    %197 = arith.mulf %196, %161 : vector<8x32xf32>
    %198 = arith.addf %194, %197 : vector<8x32xf32>
    %199 = vector.extract_strided_slice %33 {offsets = [0, 0], sizes = [8, 32], strides = [1, 1]} : vector<16x32xf32> to vector<8x32xf32>
    %c0_98 = arith.constant 0 : index
    %c0_99 = arith.constant 0 : index
    %200 = vector.load %arg19[%c0_98, %c0_99] : memref<1x32xf32, #tpu.memory_space<vmem>>, vector<1x32xf32>
    %201 = vector.broadcast %200 : vector<1x32xf32> to vector<8x32xf32>
    %202 = arith.mulf %198, %201 : vector<8x32xf32>
    %cst_100 = arith.constant dense<0.000000e+00> : vector<8xf32>
    %203 = vector.multi_reduction <add>, %202, %cst_100 [1] : vector<8x32xf32> to vector<8xf32>
    %204 = vector.shape_cast %203 : vector<8xf32> to vector<8x1xf32>
    %c0_101 = arith.constant 0 : index
    %c0_102 = arith.constant 0 : index
    %205 = vector.load %arg20[%c0_101, %c0_102] : memref<1x32xf32, #tpu.memory_space<vmem>>, vector<1x32xf32>
    %206 = vector.broadcast %205 : vector<1x32xf32> to vector<8x32xf32>
    %207 = arith.mulf %199, %206 : vector<8x32xf32>
    %cst_103 = arith.constant dense<0.000000e+00> : vector<8xf32>
    %208 = vector.multi_reduction <add>, %207, %cst_103 [1] : vector<8x32xf32> to vector<8xf32>
    %209 = vector.shape_cast %208 : vector<8xf32> to vector<8x1xf32>
    %210 = arith.addf %204, %209 : vector<8x1xf32>
    %c0_104 = arith.constant 0 : index
    %c0_105 = arith.constant 0 : index
    %211 = vector.load %arg21[%c0_104, %c0_105] : memref<1x1xf32, #tpu.memory_space<vmem>>, vector<1x1xf32>
    %212 = vector.broadcast %211 : vector<1x1xf32> to vector<8x1xf32>
    %213 = arith.addf %210, %212 : vector<8x1xf32>
    %c0_106 = arith.constant 0 : index
    %c0_107 = arith.constant 0 : index
    %214 = vector.load %arg22[%c0_106, %c0_107] : memref<8x1xf32, #tpu.memory_space<vmem>>, vector<8x1xf32>
    tpu.vector_store %arg22[%c0_106, %c0_107], %213 {strides = array<i32>} : memref<8x1xf32, #tpu.memory_space<vmem>>, vector<8x1xf32>,
    return
  }
}

</mosaic_0001>

<bundles_post_ra>
// kernel: tpu_custom_call.1
= control target key start
LH: loop header
LB: loop body
LE: loop exit
PB: predicated region body
PF: predicated region fallthrough
CT: control target
= control target key end

     0   :  { %s2451_s0 = inlined_call_operand.hbm [shape: f32[16,32], index: 0, kind: input, shape index: {}]   ;;  %s2452_s1 = inlined_call_operand.hbm [shape: f32[16,16], index: 1, kind: input, shape index: {}]   ;;  %s2453_s2 = inlined_call_operand.hbm [shape: f32[2,32,64], index: 2, kind: input, shape index: {}]   ;;  %s2454_s3 = inlined_call_operand.hbm [shape: f32[2,1,32], index: 3, kind: input, shape index: {}]   ;;  %s2455_s4 = inlined_call_operand.hbm [shape: f32[2,16,16], index: 4, kind: input, shape index: {}]   ;;  %s2456_s5 = inlined_call_operand.hbm [shape: f32[2,16,16], index: 5, kind: input, shape index: {}]   ;;  %s2457_s6 = inlined_call_operand.hbm [shape: f32[2,32,64], index: 6, kind: input, shape index: {}]   ;;  %s2458_s7 = inlined_call_operand.hbm [shape: f32[2,1,32], index: 7, kind: input, shape index: {}]   ;;  %s2459_s8 = inlined_call_operand.hbm [shape: f32[2,32,64], index: 8, kind: input, shape index: {}]   ;;  %s2460_s9 = inlined_call_operand.hbm [shape: f32[2,1,32], index: 9, kind: input, shape index: {}]   ;;  %s2461_s10 = inlined_call_operand.hbm [shape: f32[2,16], index: 10, kind: input, shape index: {}]   ;;  %s2462_s11 = inlined_call_operand.hbm [shape: f32[16,32], index: 11, kind: input, shape index: {}]   ;;  %s2463_s12 = inlined_call_operand.hbm [shape: f32[1,32], index: 12, kind: input, shape index: {}]   ;;  %s2464_s13 = inlined_call_operand.vmem [shape: f32[32,32], index: 13, kind: input, shape index: {}]   ;;  %s2465_s14 = inlined_call_operand.hbm [shape: f32[1,32], index: 14, kind: input, shape index: {}]   ;;  %s2466_s15 = inlined_call_operand.hbm [shape: f32[1,8,32], index: 15, kind: input, shape index: {}]   ;;  %s2467_s16 = inlined_call_operand.vmem [shape: f32[32,128], index: 16, kind: input, shape index: {}]   ;;  %s2468_s17 = inlined_call_operand.vmem [shape: f32[1,128], index: 17, kind: input, shape index: {}]   ;;  %s2469_s18 = inlined_call_operand.vmem [shape: f32[1,128], index: 18, kind: input, shape index: {}]   ;;  %s2470_s19 = inlined_call_operand.vmem [shape: f32[1,32], index: 19, kind: input, shape index: {}]   ;;  %s2471_s20 = inlined_call_operand.vmem [shape: f32[1,32], index: 20, kind: input, shape index: {}]   ;;  %s2472_s21 = inlined_call_operand.<no memory space> [shape: f32[1,1], index: 21, kind: input, shape index: {}]   ;;  %s2473_s22 = inlined_call_operand.vmem [shape: f32[8,1], index: 22, kind: output, shape index: {}]  }
   0x1   :  { %2485 = sst [smem:[#allocation34_spill]] %s2451_s0  ;;  %v27_v0 = vstv %s2472_s21 }
   0x2   :  { %2486 = sst [smem:[#allocation35_spill]] %s2452_s1  ;;  %28 = vst [vmem:[#allocation2] sm:$0x1] %v27_v0 }
   0x3   :  { %2487 = sst [smem:[#allocation36_spill]] %s2453_s2 }
   0x4   :  { %2488 = sst [smem:[#allocation37_spill]] %s2454_s3 }
   0x5   :  { %2489 = sst [smem:[#allocation38_spill]] %s2455_s4 }
   0x6   :  { %2490 = sst [smem:[#allocation39_spill]] %s2456_s5 }
   0x7   :  { %2491 = sst [smem:[#allocation40_spill]] %s2457_s6 }
   0x8   :  { %2492 = sst [smem:[#allocation41_spill]] %s2470_s19 }
   0x9   :  { %2493 = sst [smem:[#allocation42_spill]] %s2473_s22 }
   0xa   :  { %29 = vsyncpa [#allocation4], 0 }
   0xb   :  { %30 = vsyncpa [#allocation6], 0 }
   0xc   :  { %31 = vsyncpa [#allocation9], 0 }
   0xd   :  { %32 = vsyncpa [#allocation12], 0 }
   0xe   :  { %33 = vsyncpa [#allocation15], 0 }
   0xf   :  { %34 = vsyncpa [#allocation18], 0 }
  0x10   :  { %35 = vsyncpa [#allocation21], 0 }
  0x11   :  { %36 = vsyncpa [#allocation24], 0  ;;  %s1920_s29 = smov [#allocation5]   ;;  %s1921_s4 = smov [#allocation8]  }
  0x12   :  { %s54_s30 = sshll.u32 %s1920_s29, 4  ;;  %s78_s0 = sshll.u32 %s1921_s4, 4  ;;  %s55_s30 = int_to_ptr.vmem [resolvable:$true] %s54_s30  ;;  %s2060_s0 = int_to_ptr.vmem [resolvable:$true] %s78_s0 }
  0x13   :  { %s2494_s5 = sld [smem:[#allocation35_spill]] }
  0x19   :  { %s1574_s21 = scalar_lea.hbm %s2494_s5, 256 }
  0x1a   :  { %p1575_p0 = scmp.ne.s32.totalorder %s2494_s5, %s1574_s21  ;;  %p1578_p1 = scmp.lt.u32.totalorder %s1574_s21, %s2494_s5 }
  0x1c   :  { %p1580_p2 = pnand %p1578_p1, %p1575_p0 }
  0x1e   :  { %1583 = shalt.err (!%p1580_p2)
}
  0x1f   :  { %s1584_s2 = scalar_lea.vmem %s55_s30, 256  ;;  %p1589_p4 = scmp.lt.s32.totalorder %s55_s30, %s55_s30 }
  0x20   :  { %p1585_p3 = scmp.ne.s32.totalorder %s55_s30, %s1584_s2  ;;  %p1590_p5 = scmp.lt.s32.totalorder %s1584_s2, %s1584_s2 }
  0x22   :  { %p1591_p6 = por %p1590_p5, %p1589_p4 }
  0x24   :  { %p1592_p7 = pnand %p1591_p6, %p1585_p3 }
  0x26   :  { %1595 = shalt.err (!%p1592_p7)
}
  0x27   :  { %s2481_s27 = smov 128   ;;  %s2483_s3 = smov 8  }
  0x28   :  { %60 = dma.hbm_to_vmem [thread:$0]  %s2494_s5, 256, %s55_s30, [#allocation6], %s2481_s27, %s2481_s27, %s2483_s3  }
  0x29   :  { %s2495_s1 = sld [smem:[#allocation37_spill]] }
  0x2f   :  { %s1596_s21 = scalar_lea.hbm %s2495_s1, 32 }
  0x30   :  { %p1597_p8 = scmp.ne.s32.totalorder %s2495_s1, %s1596_s21  ;;  %p1600_p9 = scmp.lt.u32.totalorder %s1596_s21, %s2495_s1 }
  0x32   :  { %p1602_p10 = pnand %p1600_p9, %p1597_p8 }
  0x34   :  { %1605 = shalt.err (!%p1602_p10)
}
  0x35   :  { %s1606_s2 = scalar_lea.vmem %s2060_s0, 32  ;;  %p1611_p12 = scmp.lt.s32.totalorder %s2060_s0, %s2060_s0 }
  0x36   :  { %p1607_p11 = scmp.ne.s32.totalorder %s2060_s0, %s1606_s2  ;;  %p1612_p13 = scmp.lt.s32.totalorder %s1606_s2, %s1606_s2 }
  0x38   :  { %p1613_p0 = por %p1612_p13, %p1611_p12 }
  0x3a   :  { %p1614_p1 = pnand %p1613_p0, %p1607_p11 }
  0x3c   :  { %1617 = shalt.err (!%p1614_p1)
}
  0x3d   :  { %s1924_s30 = smov 16   ;;  %s1925_s5 = smov 1  }
  0x3e   :  { %84 = dma.hbm_to_vmem [thread:$0]  %s2495_s1, 32, %s2060_s0, [#allocation9], %s1924_s30, %s1924_s30, %s1925_s5  }
  0x3f   :  { %s1926_s4 = smov [#allocation11]   ;;  %s1927_s21 = smov [#allocation14]  }
  0x40   :  { %s102_s23 = sshll.u32 %s1926_s4, 4  ;;  %s126_s24 = sshll.u32 %s1927_s21, 4  ;;  %s103_s23 = int_to_ptr.vmem [resolvable:$true] %s102_s23  ;;  %s2097_s24 = int_to_ptr.vmem [resolvable:$true] %s126_s24 }
  0x41   :  { %s2496_s26 = sld [smem:[#allocation39_spill]] }
  0x47   :  { %s1618_s2 = scalar_lea.hbm %s2496_s26, 512 }
  0x48   :  { %p1619_p2 = scmp.ne.s32.totalorder %s2496_s26, %s1618_s2  ;;  %p1622_p3 = scmp.lt.u32.totalorder %s1618_s2, %s2496_s26 }
  0x4a   :  { %p1624_p4 = pnand %p1622_p3, %p1619_p2 }
  0x4c   :  { %1627 = shalt.err (!%p1624_p4)
}
  0x4d   :  { %s1628_s0 = scalar_lea.vmem %s103_s23, 512  ;;  %p1633_p6 = scmp.lt.s32.totalorder %s103_s23, %s103_s23 }
  0x4e   :  { %p1629_p5 = scmp.ne.s32.totalorder %s103_s23, %s1628_s0  ;;  %p1634_p7 = scmp.lt.s32.totalorder %s1628_s0, %s1628_s0 }
  0x50   :  { %p1635_p8 = por %p1634_p7, %p1633_p6 }
  0x52   :  { %p1636_p9 = pnand %p1635_p8, %p1629_p5 }
  0x54   :  { %1639 = shalt.err (!%p1636_p9)
}
  0x55   :  { %s2497_s1 = smov 8   ;;  %s2498_s28 = smov 128  }
  0x56   :  { %108 = dma.hbm_to_vmem [thread:$0]  %s2496_s26, 512, %s103_s23, [#allocation12], %s2498_s28, %s2498_s28, %s2497_s1  }
  0x57   :  { %s1640_s19 = scalar_lea.hbm %s2458_s7, 32 }
  0x58   :  { %p1641_p10 = scmp.ne.s32.totalorder %s2458_s7, %s1640_s19  ;;  %p1644_p11 = scmp.lt.u32.totalorder %s1640_s19, %s2458_s7 }
  0x5a   :  { %p1646_p12 = pnand %p1644_p11, %p1641_p10 }
  0x5c   :  { %1649 = shalt.err (!%p1646_p12)
}
  0x5d   :  { %s1650_s2 = scalar_lea.vmem %s2097_s24, 32  ;;  %p1655_p0 = scmp.lt.s32.totalorder %s2097_s24, %s2097_s24 }
  0x5e   :  { %p1651_p13 = scmp.ne.s32.totalorder %s2097_s24, %s1650_s2  ;;  %p1656_p1 = scmp.lt.s32.totalorder %s1650_s2, %s1650_s2 }
  0x60   :  { %p1657_p2 = por %p1656_p1, %p1655_p0 }
  0x62   :  { %p1658_p3 = pnand %p1657_p2, %p1651_p13 }
  0x64   :  { %1661 = shalt.err (!%p1658_p3)
}
  0x65   :  { %132 = dma.hbm_to_vmem [thread:$0]  %s2458_s7, 32, %s2097_s24, [#allocation15], %s1924_s30, %s1924_s30, %s1925_s5  }
  0x66   :  { %s1928_s0 = smov [#allocation17]   ;;  %s1929_s4 = smov [#allocation20]  }
  0x67   :  { %s150_s29 = sshll.u32 %s1928_s0, 4  ;;  %s172_s27 = sshll.u32 %s1929_s4, 4  ;;  %s151_s29 = int_to_ptr.vmem [resolvable:$true] %s150_s29  ;;  %s2134_s27 = int_to_ptr.vmem [resolvable:$true] %s172_s27 }
  0x68   :  { %s1662_s22 = scalar_lea.hbm %s2460_s9, 32 }
  0x69   :  { %p1663_p4 = scmp.ne.s32.totalorder %s2460_s9, %s1662_s22  ;;  %p1666_p5 = scmp.lt.u32.totalorder %s1662_s22, %s2460_s9 }
  0x6b   :  { %p1668_p6 = pnand %p1666_p5, %p1663_p4 }
  0x6d   :  { %1671 = shalt.err (!%p1668_p6)
}
  0x6e   :  { %s1672_s7 = scalar_lea.vmem %s151_s29, 32  ;;  %p1677_p8 = scmp.lt.s32.totalorder %s151_s29, %s151_s29 }
  0x6f   :  { %p1673_p7 = scmp.ne.s32.totalorder %s151_s29, %s1672_s7  ;;  %p1678_p9 = scmp.lt.s32.totalorder %s1672_s7, %s1672_s7 }
  0x71   :  { %p1679_p10 = por %p1678_p9, %p1677_p8 }
  0x73   :  { %p1680_p11 = pnand %p1679_p10, %p1673_p7 }
  0x75   :  { %1683 = shalt.err (!%p1680_p11)
}
  0x76   :  { %156 = dma.hbm_to_vmem [thread:$0]  %s2460_s9, 32, %s151_s29, [#allocation18], %s1924_s30, %s1924_s30, %s1925_s5  }
  0x77   :  { %s1684_s4 = scalar_lea.hbm %s2462_s11, 256 }
  0x78   :  { %p1685_p12 = scmp.ne.s32.totalorder %s2462_s11, %s1684_s4  ;;  %p1688_p13 = scmp.lt.u32.totalorder %s1684_s4, %s2462_s11 }
  0x7a   :  { %p1690_p0 = pnand %p1688_p13, %p1685_p12 }
  0x7c   :  { %1693 = shalt.err (!%p1690_p0)
}
  0x7d   :  { %s1694_s6 = scalar_lea.vmem %s2134_s27, 256  ;;  %p1699_p2 = scmp.lt.s32.totalorder %s2134_s27, %s2134_s27 }
  0x7e   :  { %p1695_p1 = scmp.ne.s32.totalorder %s2134_s27, %s1694_s6  ;;  %p1700_p3 = scmp.lt.s32.totalorder %s1694_s6, %s1694_s6 }
  0x80   :  { %p1701_p4 = por %p1700_p3, %p1699_p2 }
  0x82   :  { %p1702_p5 = pnand %p1701_p4, %p1695_p1 }
  0x84   :  { %1705 = shalt.err (!%p1702_p5)
}
  0x85   :  { %178 = dma.hbm_to_vmem [thread:$0]  %s2462_s11, 256, %s2134_s27, [#allocation21], %s2498_s28, %s2498_s28, %s2497_s1  }
  0x86   :  { %s1930_s5 = smov [#allocation23]   ;;  %s1931_s25 = smov [#allocation3]  }
  0x87   :  { %s197_s29 = sshll.u32 %s1930_s5, 4  ;;  %s42_s2 = sshll.u32 %s1931_s25, 4  ;;  %s198_s29 = int_to_ptr.vmem [resolvable:$true] %s197_s29  ;;  %s2171_s2 = int_to_ptr.vmem [resolvable:$true] %s42_s2 }
  0x88   :  { %s1706_s23 = scalar_lea.hbm %s2465_s14, 16 }
  0x89   :  { %p1707_p6 = scmp.ne.s32.totalorder %s2465_s14, %s1706_s23  ;;  %p1710_p7 = scmp.lt.u32.totalorder %s1706_s23, %s2465_s14 }
  0x8b   :  { %p1712_p8 = pnand %p1710_p7, %p1707_p6 }
  0x8d   :  { %1715 = shalt.err (!%p1712_p8)
}
  0x8e   :  { %s1716_s11 = scalar_lea.vmem %s198_s29, 16  ;;  %s1720_s27 = scalar_lea.vmem %s198_s29, 32 }
  0x8f   :  { %p1717_p9 = scmp.ne.s32.totalorder %s198_s29, %s1716_s11  ;;  %p1721_p10 = scmp.lt.s32.totalorder %s198_s29, %s198_s29 }
  0x90   :  { %p1722_p11 = scmp.lt.s32.totalorder %s1720_s27, %s1716_s11 }
  0x92   :  { %p1723_p12 = por %p1722_p11, %p1721_p10 }
  0x94   :  { %p1724_p13 = pnand %p1723_p12, %p1717_p9 }
  0x96   :  { %1727 = shalt.err (!%p1724_p13)
}
  0x97   :  { %200 = dma.hbm_to_vmem [thread:$0]  %s2465_s14, 16, %s198_s29, [#allocation24]  }
  0x98   :  { %s2499_s9 = sld [smem:[#allocation34_spill]] }
  0x9e   :  { %s1728_s30 = scalar_lea.hbm %s2499_s9, 256 }
  0x9f   :  { %p1729_p0 = scmp.ne.s32.totalorder %s2499_s9, %s1728_s30  ;;  %p1732_p1 = scmp.lt.u32.totalorder %s1728_s30, %s2499_s9 }
  0xa1   :  { %p1734_p2 = pnand %p1732_p1, %p1729_p0 }
  0xa3   :  { %1737 = shalt.err (!%p1734_p2)
}
  0xa4   :  { %s1738_s23 = scalar_lea.vmem %s2171_s2, 256  ;;  %p1743_p4 = scmp.lt.s32.totalorder %s2171_s2, %s2171_s2 }
  0xa5   :  { %p1739_p3 = scmp.ne.s32.totalorder %s2171_s2, %s1738_s23  ;;  %p1744_p5 = scmp.lt.s32.totalorder %s1738_s23, %s1738_s23 }
  0xa7   :  { %p1745_p6 = por %p1744_p5, %p1743_p4 }
  0xa9   :  { %p1746_p7 = pnand %p1745_p6, %p1739_p3 }
  0xab   :  { %1749 = shalt.err (!%p1746_p7)
}
  0xac   :  { %48 = dma.hbm_to_vmem [thread:$0]  %s2499_s9, 256, %s2171_s2, [#allocation4], %s2498_s28, %s2498_s28, %s2497_s1  }
  0xad   :  { %s1932_s26 = smov [#allocation7]   ;;  %s1933_s4 = smov [#allocation10]  }
  0xae   :  { %s66_s0 = sshll.u32 %s1932_s26, 4  ;;  %s90_s3 = sshll.u32 %s1933_s4, 4  ;;  %s67_s0 = int_to_ptr.vmem [resolvable:$true] %s66_s0  ;;  %s2205_s3 = int_to_ptr.vmem [resolvable:$true] %s90_s3 }
  0xaf   :  { %s2500_s19 = sld [smem:[#allocation36_spill]] }
  0xb5   :  { %s1750_s22 = scalar_lea.hbm %s2500_s19, 1024 }
  0xb6   :  { %p1751_p8 = scmp.ne.s32.totalorder %s2500_s19, %s1750_s22  ;;  %p1754_p9 = scmp.lt.u32.totalorder %s1750_s22, %s2500_s19 }
  0xb8   :  { %p1756_p10 = pnand %p1754_p9, %p1751_p8 }
  0xba   :  { %1759 = shalt.err (!%p1756_p10)
}
  0xbb   :  { %s1760_s2 = scalar_lea.vmem %s67_s0, 1024  ;;  %p1765_p12 = scmp.lt.s32.totalorder %s67_s0, %s67_s0 }
  0xbc   :  { %p1761_p11 = scmp.ne.s32.totalorder %s67_s0, %s1760_s2  ;;  %p1766_p13 = scmp.lt.s32.totalorder %s1760_s2, %s1760_s2 }
  0xbe   :  { %p1767_p0 = por %p1766_p13, %p1765_p12 }
  0xc0   :  { %p1768_p1 = pnand %p1767_p0, %p1761_p11 }
  0xc2   :  { %1771 = shalt.err (!%p1768_p1)
}
  0xc3   :  { %72 = dma.hbm_to_vmem [thread:$0]  %s2500_s19, 1024, %s67_s0, [#allocation6], %s2498_s28, %s2498_s28, %s2497_s1  }
  0xc4   :  { %s2501_s23 = sld [smem:[#allocation38_spill]] }
  0xca   :  { %s1772_s14 = scalar_lea.hbm %s2501_s23, 512 }
  0xcb   :  { %p1773_p2 = scmp.ne.s32.totalorder %s2501_s23, %s1772_s14  ;;  %p1776_p3 = scmp.lt.u32.totalorder %s1772_s14, %s2501_s23 }
  0xcd   :  { %p1778_p4 = pnand %p1776_p3, %p1773_p2 }
  0xcf   :  { %1781 = shalt.err (!%p1778_p4)
}
  0xd0   :  { %s1782_s27 = scalar_lea.vmem %s2205_s3, 512  ;;  %p1787_p6 = scmp.lt.s32.totalorder %s2205_s3, %s2205_s3 }
  0xd1   :  { %p1783_p5 = scmp.ne.s32.totalorder %s2205_s3, %s1782_s27  ;;  %p1788_p7 = scmp.lt.s32.totalorder %s1782_s27, %s1782_s27 }
  0xd3   :  { %p1789_p8 = por %p1788_p7, %p1787_p6 }
  0xd5   :  { %p1790_p9 = pnand %p1789_p8, %p1783_p5 }
  0xd7   :  { %1793 = shalt.err (!%p1790_p9)
}
  0xd8   :  { %96 = dma.hbm_to_vmem [thread:$0]  %s2501_s23, 512, %s2205_s3, [#allocation9], %s2498_s28, %s2498_s28, %s2497_s1  }
  0xd9   :  { %s1934_s22 = smov [#allocation13]   ;;  %s1935_s6 = smov [#allocation16]  }
  0xda   :  { %s114_s21 = sshll.u32 %s1934_s22, 4  ;;  %s138_s30 = sshll.u32 %s1935_s6, 4  ;;  %s115_s21 = int_to_ptr.vmem [resolvable:$true] %s114_s21  ;;  %s2242_s30 = int_to_ptr.vmem [resolvable:$true] %s138_s30 }
  0xdb   :  { %s2502_s9 = sld [smem:[#allocation40_spill]] }
  0xe1   :  { %s1794_s25 = scalar_lea.hbm %s2502_s9, 1024 }
  0xe2   :  { %p1795_p10 = scmp.ne.s32.totalorder %s2502_s9, %s1794_s25  ;;  %p1798_p11 = scmp.lt.u32.totalorder %s1794_s25, %s2502_s9 }
  0xe4   :  { %p1800_p12 = pnand %p1798_p11, %p1795_p10 }
  0xe6   :  { %1803 = shalt.err (!%p1800_p12)
}
  0xe7   :  { %s1804_s3 = scalar_lea.vmem %s115_s21, 1024  ;;  %p1809_p0 = scmp.lt.s32.totalorder %s115_s21, %s115_s21 }
  0xe8   :  { %p1805_p13 = scmp.ne.s32.totalorder %s115_s21, %s1804_s3  ;;  %p1810_p1 = scmp.lt.s32.totalorder %s1804_s3, %s1804_s3 }
  0xea   :  { %p1811_p2 = por %p1810_p1, %p1809_p0 }
  0xec   :  { %p1812_p3 = pnand %p1811_p2, %p1805_p13 }
  0xee   :  { %1815 = shalt.err (!%p1812_p3)
}
  0xef   :  { %120 = dma.hbm_to_vmem [thread:$0]  %s2502_s9, 1024, %s115_s21, [#allocation12], %s2498_s28, %s2498_s28, %s2497_s1  }
  0xf0   :  { %s1816_s27 = scalar_lea.hbm %s2459_s8, 1024 }
  0xf1   :  { %p1817_p4 = scmp.ne.s32.totalorder %s2459_s8, %s1816_s27  ;;  %p1820_p5 = scmp.lt.u32.totalorder %s1816_s27, %s2459_s8 }
  0xf3   :  { %p1822_p6 = pnand %p1820_p5, %p1817_p4 }
  0xf5   :  { %1825 = shalt.err (!%p1822_p6)
}
  0xf6   :  { %s1826_s5 = scalar_lea.vmem %s2242_s30, 1024  ;;  %p1831_p8 = scmp.lt.s32.totalorder %s2242_s30, %s2242_s30 }
  0xf7   :  { %p1827_p7 = scmp.ne.s32.totalorder %s2242_s30, %s1826_s5  ;;  %p1832_p9 = scmp.lt.s32.totalorder %s1826_s5, %s1826_s5 }
  0xf9   :  { %p1833_p10 = por %p1832_p9, %p1831_p8 }
  0xfb   :  { %p1834_p11 = pnand %p1833_p10, %p1827_p7 }
  0xfd   :  { %1837 = shalt.err (!%p1834_p11)
}
  0xfe   :  { %144 = dma.hbm_to_vmem [thread:$0]  %s2459_s8, 1024, %s2242_s30, [#allocation15], %s2498_s28, %s2498_s28, %s2497_s1  }
  0xff   :  { %s1936_s9 = smov [#allocation19]   ;;  %s1937_s7 = smov [#allocation22]  }
 0x100   :  { %s163_s25 = sshll.u32 %s1936_s9, 4  ;;  %s185_s24 = sshll.u32 %s1937_s7, 4  ;;  %s164_s25 = int_to_ptr.vmem [resolvable:$true] %s163_s25  ;;  %s186_s24 = int_to_ptr.vmem [resolvable:$true] %s185_s24 }
 0x101   :  { %s1838_s3 = scalar_lea.hbm %s2461_s10, 32 }
 0x102   :  { %p1839_p12 = scmp.ne.s32.totalorder %s2461_s10, %s1838_s3  ;;  %p1842_p13 = scmp.lt.u32.totalorder %s1838_s3, %s2461_s10 }
 0x104   :  { %p1844_p0 = pnand %p1842_p13, %p1839_p12 }
 0x106   :  { %1847 = shalt.err (!%p1844_p0)
}
 0x107   :  { %s1848_s8 = scalar_lea.vmem %s164_s25, 32  ;;  %p1853_p2 = scmp.lt.s32.totalorder %s164_s25, %s164_s25 }
 0x108   :  { %p1849_p1 = scmp.ne.s32.totalorder %s164_s25, %s1848_s8  ;;  %p1854_p3 = scmp.lt.s32.totalorder %s1848_s8, %s1848_s8 }
 0x10a   :  { %p1855_p4 = por %p1854_p3, %p1853_p2 }
 0x10c   :  { %p1856_p5 = pnand %p1855_p4, %p1849_p1 }
 0x10e   :  { %1859 = shalt.err (!%p1856_p5)
}
 0x10f   :  { %166 = dma.hbm_to_vmem [thread:$0]  %s2461_s10, 32, %s164_s25, [#allocation18]  }
 0x110   :  { %s1860_s0 = scalar_lea.hbm %s2463_s12, 16 }
 0x111   :  { %p1861_p6 = scmp.ne.s32.totalorder %s2463_s12, %s1860_s0  ;;  %p1864_p7 = scmp.lt.u32.totalorder %s1860_s0, %s2463_s12 }
 0x113   :  { %p1866_p8 = pnand %p1864_p7, %p1861_p6 }
 0x115   :  { %1869 = shalt.err (!%p1866_p8)
}
 0x116   :  { %s1870_s21 = scalar_lea.vmem %s186_s24, 16  ;;  %s1874_s2 = scalar_lea.vmem %s186_s24, 32 }
 0x117   :  { %p1871_p9 = scmp.ne.s32.totalorder %s186_s24, %s1870_s21  ;;  %p1875_p10 = scmp.lt.s32.totalorder %s186_s24, %s186_s24 }
 0x118   :  { %p1876_p11 = scmp.lt.s32.totalorder %s1874_s2, %s1870_s21 }
 0x11a   :  { %p1877_p12 = por %p1876_p11, %p1875_p10 }
 0x11c   :  { %p1878_p13 = pnand %p1877_p12, %p1871_p9 }
 0x11e   :  { %1881 = shalt.err (!%p1878_p13)
}
 0x11f   :  { %188 = dma.hbm_to_vmem [thread:$0]  %s2463_s12, 16, %s186_s24, [#allocation21]  }
 0x120   :  { %s1938_s25 = smov [#allocation25]   ;;  %s1882_s3 = scalar_lea.hbm %s2466_s15, 128 }
 0x121   :  { %s207_s7 = sshll.u32 %s1938_s25, 4  ;;  %p1883_p0 = scmp.ne.s32.totalorder %s2466_s15, %s1882_s3  ;;  %s208_s7 = int_to_ptr.vmem [resolvable:$true] %s207_s7 }
 0x122   :  { %p1886_p1 = scmp.lt.u32.totalorder %s1882_s3, %s2466_s15 }
 0x124   :  { %p1888_p2 = pnand %p1886_p1, %p1883_p0 }
 0x126   :  { %1891 = shalt.err (!%p1888_p2)
}
 0x127   :  { %s1892_s8 = scalar_lea.vmem %s208_s7, 128  ;;  %p1897_p4 = scmp.lt.s32.totalorder %s208_s7, %s208_s7 }
 0x128   :  { %p1893_p3 = scmp.ne.s32.totalorder %s208_s7, %s1892_s8  ;;  %p1898_p5 = scmp.lt.s32.totalorder %s1892_s8, %s1892_s8 }
 0x12a   :  { %p1899_p6 = por %p1898_p5, %p1897_p4 }
 0x12c   :  { %p1900_p7 = pnand %p1899_p6, %p1893_p3 }
 0x12e   :  { %1903 = shalt.err (!%p1900_p7)
}
 0x12f   :  { %210 = dma.hbm_to_vmem [thread:$0]  %s2466_s15, 128, %s208_s7, [#allocation24]  }
 0x130   :  { %1904 = dma.done.wait [#allocation4], 256  }
 0x131   :  { %1905 = vsyncadd [#allocation4], 4294967040 }
 0x132   :  { %1906 = dma.done.wait [#allocation6], 1280  }
 0x133   :  { %1907 = vsyncadd [#allocation6], 4294966016 }
 0x134   :  { %1908 = dma.done.wait [#allocation9], 544  }
 0x135   :  { %1909 = vsyncadd [#allocation9], 4294966752 }
 0x136   :  { %1910 = dma.done.wait [#allocation12], 1536  }
 0x137   :  { %1911 = vsyncadd [#allocation12], 4294965760 }
 0x138   :  { %1912 = dma.done.wait [#allocation15], 1056  }
 0x139   :  { %1913 = vsyncadd [#allocation15], 4294966240 }
 0x13a   :  { %1914 = dma.done.wait [#allocation18], 64  }
 0x13b   :  { %1915 = vsyncadd [#allocation18], 4294967232 }
 0x13c   :  { %1916 = dma.done.wait [#allocation21], 272  }
 0x13d   :  { %1917 = vsyncadd [#allocation21], 4294967024 }
 0x13e   :  { %1918 = dma.done.wait [#allocation24], 144  }
 0x13f   :  { %1919 = vsyncadd [#allocation24], 4294967152  ;;  %v1939_v1 = vmov 0.0   ;;  %vm1940_vm0 = vmmov 0   ;;  %v273_v2 = vld [vmem:[#allocation7] sm:$0xff]  ;;  %v274_v3 = vld [vmem:[#allocation7 + $0x8] sm:$0xff] }
 0x140   :  { %1410 = vmatprep.subr.bf16.mxu0 %v1939_v1  ;;  %1414 = vmatprep.mubr.msk.bf16.mxu0 %vm1940_vm0, %v1939_v1  ;;  %v275_v4 = vld [vmem:[#allocation7 + $0x10] sm:$0xff]  ;;  %v278_v5 = vpack.c.bf16 %v274_v3, %v273_v2  ;;  %v276_v6 = vld [vmem:[#allocation7 + $0x18] sm:$0xff]  ;;  %v269_v8 = vld [vmem:[#allocation3] sm:$0xff]  ;;  %vm280_vm1 = vcmask 261120   ;;  %s1941_s15 = smov 96   ;;  %vm331_vm2 = vcmask 130048  }
 0x141   :  { %1418 = vmatprep.subr.bf16.mxu1 %v1939_v1  ;;  %1420 = vmatprep.mubr.msk.bf16.mxu1 %vm1940_vm0, %v1939_v1  ;;  %v279_v7 = vpack.c.bf16 %v276_v6, %v275_v4  ;;  %v270_v9 = vld [vmem:[#allocation3 + $0x8] sm:$0xff]  ;;  %v271_v16 = vld [vmem:[#allocation5] sm:$0xff]  ;;  %v272_v17 = vld [vmem:[#allocation5 + $0x8] sm:$0xff]  ;;  %vm1324_vm3 = vcmask 7168   ;;  %s2504_s8 = sld [smem:[#allocation42_spill]] }
 0x142   :  { %1411 = vmatpush3.bf16.msra.mxu0 %v278_v5  ;;  %v277_v10 = vpack.c.bf16 %v270_v9, %v269_v8  ;;  %v325_v19 = vpack.c.bf16 %v272_v17, %v271_v16  ;;  %v390_v20 = vld [vmem:[#allocation7 + $0x20] sm:$0xff]  ;;  %v391_v21 = vld [vmem:[#allocation7 + $0x28] sm:$0xff]  ;;  %v392_v22 = vld [vmem:[#allocation7 + $0x30] sm:$0xff] }
 0x143   :  { %1412 = vmatprep.subr.bf16.mxu0 %v1939_v1  ;;  %v395_v23 = vpack.c.bf16 %v391_v21, %v390_v20  ;;  %v393_v24 = vld [vmem:[#allocation7 + $0x38] sm:$0xff]  ;;  %v1340_v27 = vld [vmem:[#allocation8] ss:$0 sm:$0xff]  ;;  %v551_v44 = vld [vmem:[#allocation13] sm:$0xff] }
 0x144   :  { %v396_v25 = vpack.c.bf16 %v393_v24, %v392_v22  ;;  %v552_v45 = vld [vmem:[#allocation13 + $0x8] sm:$0xff]  ;;  %v1343_v48 = vld [vmem:[#allocation8 + $0x1] ss:$0 sm:$0xff]  ;;  %v501_v57 = vld [vmem:[#allocation10] sm:$0xff] }
 0x145   :  { %v557_v46 = vpack.c.bf16 %v552_v45, %v551_v44  ;;  %v502_v58 = vld [vmem:[#allocation10 + $0x8] sm:$0xff]  ;;  %v553_v62 = vld [vmem:[#allocation13 + $0x10] sm:$0xff]  ;;  %v554_v63 = vld [vmem:[#allocation13 + $0x18] sm:$0xff] }
 0x146   :  { %1413 = vmatpush3.bf16.msra.mxu0 %v279_v7  ;;  %v503_v61 = vpack.c.bf16 %v502_v58, %v501_v57  ;;  %v558_v0 = vpack.c.bf16 %v554_v63, %v553_v62  ;;  %v665_v16 = vld [vmem:[#allocation16] sm:$0xff]  ;;  %v666_v17 = vld [vmem:[#allocation16 + $0x8] sm:$0xff]  ;;  %v668_v20 = vld [vmem:[#allocation16 + $0x18] sm:$0xff] }
 0x147   :  { %1432 = vmatprep.subr.bf16.mxu0 %v1939_v1  ;;  %v1347_v22 = vld [vmem:[#allocation14] ss:$0 sm:$0xff] }
 0x149   :  { %1415 = vmatmul.mubr.msk.bf16.vlgmr.msra.gmra.mrb[0].mxu0 %vm280_vm1, %v277_v10 }
 0x14a   :  { %1434 = vmatprep.mubr.msk.bf16.mxu0 %vm1940_vm0, %v1939_v1 }
 0x21c   :  { %v318_v11 = vpop.f32.mrb[0].mxu0 }
 0x21d   :  { %v1416_v12 = vpop.f32.mrb[1].mxu0 }
 0x21e   :  { %v321_v13 = vpop.f32.mrb[2].mxu0  ;;  %v549_v12 = vld [vmem:[#allocation11] sm:$0xff] }
 0x21f   :  { %v1417_v14 = vpop.f32.mrb[3].mxu0  ;;  %v326_v15 = vpack.c.bf16 %v321_v13, %v318_v11 }
 0x221   :  { %328 = vrot.lane.b32.xlu0 %v326_v15, %s1941_s15 }
 0x293   :  { %v329_v18 = vpop.permute.xlu0 %328 }
 0x294   :  { %1419 = vmatpush3.bf16.msra.mxu1 %v329_v18  ;;  %v671_v18 = vpack.c.bf16 %v666_v17, %v665_v16 }
 0x295   :  { %1424 = vmatprep.subr.bf16.mxu1 %v1939_v1 }
 0x297   :  { %1421 = vmatmul.mubr.msk.bf16.vlgmr.msra.gmra.mrb[0].mxu1 %vm331_vm2, %v325_v19 }
 0x298   :  { %1428 = vmatprep.mubr.msk.bf16.mxu1 %vm1940_vm0, %v1939_v1  ;;  %1425 = vmatpush3.bf16.msra.mxu1 %v395_v23 }
 0x299   :  { %1426 = vmatprep.subr.bf16.mxu1 %v1939_v1 }
 0x29c   :  { %1427 = vmatpush3.bf16.msra.mxu1 %v396_v25 }
 0x29d   :  { %1438 = vmatprep.subr.bf16.mxu1 %v1939_v1 }
 0x36a   :  { %v369_v26 = vpop.f32.mrb[0].mxu1 }
 0x36b   :  { %v376_v28 = vadd.f32 %v369_v26, %v318_v11  ;;  %v1422_v29 = vpop.f32.mrb[1].mxu1 }
 0x36c   :  { %v372_v30 = vpop.f32.mrb[2].mxu1 }
 0x36d   :  { %v385_v31 = vadd.f32 %v1340_v27, %v376_v28  ;;  %v377_v32 = vadd.f32 %v372_v30, %v321_v13  ;;  %v1423_v33 = vpop.f32.mrb[3].mxu1  ;;  %v550_v13 = vld [vmem:[#allocation11 + $0x8] sm:$0xff] }
 0x36e   :  { %v603_v15 = vpack.c.bf16 %v550_v13, %v549_v12  ;;  %v1354_v12 = vld [vmem:[#allocation14 + $0x1] ss:$0 sm:$0xff] }
 0x36f   :  { %v386_v34 = vadd.f32 %v1340_v27, %v377_v32  ;;  %1550 = vtanh.f32 %v385_v31 }
 0x371   :  { %1552 = vtanh.f32 %v386_v34  ;;  %v772_v34 = vld [vmem:[#allocation10 + $0x10] sm:$0xff] }
 0x379   :  { %v1551_v35 = vpop.eup %1550 }
 0x37b   :  { %v1553_v36 = vpop.eup %1552 }
 0x37c   :  { %v394_v37 = vpack.c.bf16 %v1553_v36, %v1551_v35  ;;  %v773_v35 = vld [vmem:[#allocation10 + $0x18] sm:$0xff] }
 0x37d   :  { %v774_v36 = vpack.c.bf16 %v773_v35, %v772_v34 }
 0x37e   :  { %1429 = vmatmul.mubr.msk.bf16.vlgmr.msra.gmra.mrb[4].mxu1 %vm280_vm1, %v394_v37 }
 0x37f   :  { %1440 = vmatprep.mubr.msk.bf16.mxu1 %vm1940_vm0, %v1939_v1 }
 0x451   :  { %v434_v38 = vpop.f32.mrb[4].mxu1 }
 0x452   :  { %v1430_v39 = vpop.f32.mrb[5].mxu1 }
 0x453   :  { %v437_v40 = vpop.f32.mrb[6].mxu1 }
 0x454   :  { %v441_v41 = vpack.c.bf16 %v437_v40, %v434_v38  ;;  %v1431_v42 = vpop.f32.mrb[7].mxu1 }
 0x456   :  { %443 = vrot.lane.b32.xlu0 %v441_v41, %s1941_s15 }
 0x4c8   :  { %v444_v43 = vpop.permute.xlu0 %443 }
 0x4c9   :  { %1433 = vmatpush3.bf16.msra.mxu0 %v444_v43 }
 0x4ca   :  { %1444 = vmatprep.subr.bf16.mxu0 %v1939_v1 }
 0x4cc   :  { %1435 = vmatmul.mubr.msk.bf16.vlgmr.msra.gmra.mrb[4].mxu0 %vm331_vm2, %v325_v19  ;;  %v667_v19 = vld [vmem:[#allocation16 + $0x10] sm:$0xff] }
 0x4cd   :  { %1448 = vmatprep.mubr.msk.bf16.mxu0 %vm1940_vm0, %v1939_v1  ;;  %1445 = vmatpush3.bf16.msra.mxu0 %v557_v46  ;;  %v672_v21 = vpack.c.bf16 %v668_v20, %v667_v19 }
 0x4ce   :  { %1446 = vmatprep.subr.bf16.mxu0 %v1939_v1 }
 0x4d1   :  { %1447 = vmatpush3.bf16.msra.mxu0 %v558_v0 }
 0x4d2   :  { %1458 = vmatprep.subr.bf16.mxu0 %v1939_v1 }
 0x59f   :  { %v480_v47 = vpop.f32.mrb[4].mxu0 }
 0x5a0   :  { %v487_v49 = vadd.f32 %v480_v47, %v434_v38  ;;  %v1436_v50 = vpop.f32.mrb[5].mxu0  ;;  %v823_v47 = vld [vmem:[#allocation13 + $0x20] sm:$0xff] }
 0x5a1   :  { %v483_v51 = vpop.f32.mrb[6].mxu0 }
 0x5a2   :  { %v497_v52 = vadd.f32 %v1343_v48, %v487_v49  ;;  %v488_v53 = vadd.f32 %v483_v51, %v437_v40  ;;  %v1437_v54 = vpop.f32.mrb[7].mxu0  ;;  %v825_v51 = vld [vmem:[#allocation13 + $0x30] sm:$0xff] }
 0x5a4   :  { %v498_v55 = vadd.f32 %v1343_v48, %v488_v53  ;;  %1554 = vtanh.f32 %v497_v52  ;;  %v824_v48 = vld [vmem:[#allocation13 + $0x28] sm:$0xff]  ;;  %v826_v52 = vld [vmem:[#allocation13 + $0x38] sm:$0xff] }
 0x5a5   :  { %v830_v50 = vpack.c.bf16 %v824_v48, %v823_v47  ;;  %v831_v53 = vpack.c.bf16 %v826_v52, %v825_v51  ;;  %v1357_v52 = vld [vmem:[#allocation17 + $0x1] ss:$0 sm:$0xff] }
 0x5a6   :  { %1556 = vtanh.f32 %v498_v55 }
 0x5ae   :  { %v2342_v56 = vpop.eup %1554 }
 0x5b0   :  { %v1557_v59 = vpop.eup %1556 }
 0x5b1   :  { %v504_v60 = vpack.c.bf16 %v1557_v59, %v2342_v56 }
 0x5b3   :  { %1439 = vmatpush3.bf16.msra.mxu1 %v504_v60 }
 0x5b4   :  { %1452 = vmatprep.subr.bf16.mxu1 %v1939_v1 }
 0x5b6   :  { %1441 = vmatmul.mubr.msk.bf16.vlgmr.msra.gmra.mrb[8].mxu1 %vm331_vm2, %v503_v61 }
 0x5b7   :  { %1454 = vmatprep.mubr.msk.bf16.mxu1 %vm1940_vm0, %v1939_v1 }
 0x689   :  { %v542_v2 = vpop.f32.mrb[8].mxu1 }
 0x68a   :  { %v1442_v3 = vpop.f32.mrb[9].mxu1 }
 0x68b   :  { %v545_v4 = vpop.f32.mrb[10].mxu1  ;;  %v821_v3 = vld [vmem:[#allocation11 + $0x18] sm:$0xff] }
 0x68c   :  { %v556_v5 = vpack.c.bf16 %v545_v4, %v542_v2  ;;  %v1443_v6 = vpop.f32.mrb[11].mxu1  ;;  %v820_v2 = vld [vmem:[#allocation11 + $0x10] sm:$0xff] }
 0x68d   :  { %v939_v6 = vld [vmem:[#allocation16 + $0x20] sm:$0xff] }
 0x68e   :  { %1449 = vmatmul.mubr.msk.bf16.vlgmr.msra.gmra.mrb[8].mxu0 %vm280_vm1, %v556_v5  ;;  %v2378_v5 = vpack.c.bf16 %v821_v3, %v820_v2  ;;  %v1135_v3 = vld [vmem:[%s2464_s13 + $0x10] sm:$0xff] }
 0x68f   :  { %1462 = vmatprep.mubr.msk.bf16.mxu0 %vm1940_vm0, %v1939_v1  ;;  %1459 = vmatpush3.bf16.msra.mxu0 %v671_v18 }
 0x690   :  { %1460 = vmatprep.subr.bf16.mxu0 %v1939_v1 }
 0x693   :  { %1461 = vmatpush3.bf16.msra.mxu0 %v672_v21  ;;  %v1047_v21 = vld [vmem:[#allocation20] sm:$0xff] }
 0x694   :  { %1472 = vmatprep.subr.bf16.mxu0 %v1939_v1 }
 0x761   :  { %v596_v7 = vpop.f32.mrb[8].mxu0 }
 0x762   :  { %v1450_v8 = vpop.f32.mrb[9].mxu0 }
 0x763   :  { %v599_v9 = vpop.f32.mrb[10].mxu0 }
 0x764   :  { %v1451_v10 = vpop.f32.mrb[11].mxu0  ;;  %v604_v11 = vpack.c.bf16 %v599_v9, %v596_v7 }
 0x765   :  { %v942_v10 = vld [vmem:[#allocation16 + $0x38] sm:$0xff] }
 0x766   :  { %606 = vrot.lane.b32.xlu1 %v604_v11, %s1941_s15 }
 0x7d8   :  { %v607_v14 = vpop.permute.xlu1 %606 }
 0x7d9   :  { %1453 = vmatpush3.bf16.msra.mxu1 %v607_v14 }
 0x7da   :  { %1466 = vmatprep.subr.bf16.mxu1 %v1939_v1 }
 0x7dc   :  { %1455 = vmatmul.mubr.msk.bf16.vlgmr.msra.gmra.mrb[12].mxu1 %vm331_vm2, %v603_v15 }
 0x7dd   :  { %1468 = vmatprep.mubr.msk.bf16.mxu1 %vm1940_vm0, %v1939_v1 }
 0x8af   :  { %v646_v23 = vpop.f32.mrb[12].mxu1 }
 0x8b0   :  { %v653_v24 = vadd.f32 %v646_v23, %v596_v7  ;;  %v1456_v25 = vpop.f32.mrb[13].mxu1  ;;  %v940_v7 = vld [vmem:[#allocation16 + $0x28] sm:$0xff] }
 0x8b1   :  { %v649_v26 = vpop.f32.mrb[14].mxu1  ;;  %v946_v8 = vpack.c.bf16 %v940_v7, %v939_v6  ;;  %v1191_v6 = vld [vmem:[%s2467_s16] sm:$0xff]  ;;  %v1192_v7 = vld [vmem:[%s2467_s16 + $0x8] sm:$0xff] }
 0x8b2   :  { %v661_v27 = vadd.f32 %v1347_v22, %v653_v24  ;;  %v654_v28 = vadd.f32 %v649_v26, %v599_v9  ;;  %v1457_v29 = vpop.f32.mrb[15].mxu1  ;;  %v941_v9 = vld [vmem:[#allocation16 + $0x30] sm:$0xff] }
 0x8b3   :  { %v947_v11 = vpack.c.bf16 %v942_v10, %v941_v9  ;;  %v1101_v29 = vlaneseq }
 0x8b4   :  { %v662_v30 = vadd.f32 %v1347_v22, %v654_v28  ;;  %v663_v31 = vmax.f32 %v661_v27, 0.0  ;;  %v1048_v22 = vld [vmem:[#allocation20 + $0x8] sm:$0xff]  ;;  %v1046_v27 = vld [vmem:[#allocation19] sm:$0x3] }
 0x8b5   :  { %v1050_v25 = vpack.c.bf16 %v1048_v22, %v1047_v21  ;;  %v1049_v28 = vpack.c.bf16 %v1046_v27, %v1046_v27  ;;  %v1102_v35 = vshrl.u32 %v1101_v29, 7  ;;  %v1193_v27 = vld [vmem:[%s2467_s16 + $0x10] sm:$0xff] }
 0x8b6   :  { %v664_v32 = vmax.f32 %v662_v30, 0.0 }
 0x8b8   :  { %v670_v33 = vpack.c.bf16 %v664_v32, %v663_v31 }
 0x8ba   :  { %1463 = vmatmul.mubr.msk.bf16.vlgmr.msra.gmra.mrb[12].mxu0 %vm280_vm1, %v670_v33 }
 0x8bb   :  { %1473 = vmatpush3.bf16.msra.mxu0 %v504_v60  ;;  %1474 = vmatprep.mubr.msk.bf16.mxu0 %vm1940_vm0, %v1939_v1 }
 0x8bc   :  { %1486 = vmatprep.subr.bf16.mxu0 %v1939_v1 }
 0x8c2   :  { %1475 = vmatmul.mubr.msk.bf16.vlgmr.msra.gmra.mrb[16].mxu0 %vm331_vm2, %v774_v36  ;;  %v1350_v36 = vld [vmem:[#allocation17] ss:$0 sm:$0xff] }
 0x8c3   :  { %1488 = vmatprep.mubr.msk.bf16.mxu0 %vm1940_vm0, %v1939_v1 }
 0x98d   :  { %v710_v37 = vpop.f32.mrb[12].mxu0 }
 0x98e   :  { %v1464_v38 = vpop.f32.mrb[13].mxu0 }
 0x98f   :  { %v713_v39 = vpop.f32.mrb[14].mxu0 }
 0x990   :  { %v717_v40 = vpack.c.bf16 %v713_v39, %v710_v37  ;;  %v1465_v41 = vpop.f32.mrb[15].mxu0  ;;  %v1103_v39 = vsub.s32 0, %v1102_v35 }
 0x992   :  { %719 = vrot.lane.b32.xlu1 %v717_v40, %s1941_s15  ;;  %v1112_v40 = vsub.s32 1, %v1102_v35 }
 0x995   :  { %v812_v42 = vpop.f32.mrb[16].mxu0 }
 0x996   :  { %v1476_v43 = vpop.f32.mrb[17].mxu0 }
 0x997   :  { %v815_v44 = vpop.f32.mrb[18].mxu0 }
 0x998   :  { %v829_v45 = vpack.c.bf16 %v815_v44, %v812_v42  ;;  %v1477_v46 = vpop.f32.mrb[19].mxu0 }
 0xa04   :  { %v720_v49 = vpop.permute.xlu1 %719 }
 0xa05   :  { %1467 = vmatpush3.bf16.msra.mxu1 %v720_v49 }
 0xa06   :  { %1478 = vmatprep.subr.bf16.mxu1 %v1939_v1 }
 0xa08   :  { %1469 = vmatmul.mubr.msk.bf16.vlgmr.msra.gmra.mrb[16].mxu1 %vm331_vm2, %v603_v15 }
 0xa09   :  { %1479 = vmatpush3.bf16.msra.mxu1 %v830_v50  ;;  %1482 = vmatprep.mubr.msk.bf16.mxu1 %vm1940_vm0, %v1939_v1 }
 0xa0a   :  { %1480 = vmatprep.subr.bf16.mxu1 %v1939_v1 }
 0xa0d   :  { %1481 = vmatpush3.bf16.msra.mxu1 %v831_v53 }
 0xa0e   :  { %1492 = vmatprep.subr.bf16.mxu1 %v1939_v1 }
 0xa10   :  { %1483 = vmatmul.mubr.msk.bf16.vlgmr.msra.gmra.mrb[20].mxu1 %vm280_vm1, %v829_v45 }
 0xa11   :  { %1496 = vmatprep.mubr.msk.bf16.mxu1 %vm1940_vm0, %v1939_v1  ;;  %1493 = vmatpush3.bf16.msra.mxu1 %v946_v8  ;;  %v1196_v8 = vpack.c.bf16 %v1192_v7, %v1191_v6 }
 0xa12   :  { %1494 = vmatprep.subr.bf16.mxu1 %v1939_v1 }
 0xa15   :  { %1495 = vmatpush3.bf16.msra.mxu1 %v947_v11 }
 0xa16   :  { %1506 = vmatprep.subr.bf16.mxu1 %v1939_v1 }
 0xadb   :  { %v756_v54 = vpop.f32.mrb[16].mxu1 }
 0xadc   :  { %v762_v55 = vadd.f32 %v756_v54, %v710_v37  ;;  %v1470_v57 = vpop.f32.mrb[17].mxu1  ;;  %v1358_v37 = vld [vmem:[#allocation22] ss:$0 sm:$0xff] }
 0xadd   :  { %v759_v58 = vpop.f32.mrb[18].mxu1 }
 0xade   :  { %v1471_v59 = vpop.f32.mrb[19].mxu1  ;;  %v2395_v38 = vadd.f32 %v1350_v36, %v762_v55 }
 0xae0   :  { %v770_v45 = vmax.f32 %v2395_v38, 0.0  ;;  %v1362_v38 = vld [vmem:[%s2468_s17] ss:$0 sm:$0xff] }
 0xae3   :  { %v869_v60 = vpop.f32.mrb[20].mxu1 }
 0xae4   :  { %v1484_v61 = vpop.f32.mrb[21].mxu1 }
 0xae5   :  { %v872_v62 = vpop.f32.mrb[22].mxu1 }
 0xae6   :  { %v877_v63 = vpack.c.bf16 %v872_v62, %v869_v60  ;;  %v1485_v0 = vpop.f32.mrb[23].mxu1 }
 0xae7   :  { %v1134_v0 = vld [vmem:[%s2464_s13 + $0x8] sm:$0xff] }
 0xae8   :  { %879 = vrot.lane.b32.xlu0 %v877_v63, %s1941_s15  ;;  %v1133_v63 = vld [vmem:[%s2464_s13] sm:$0xff] }
 0xae9   :  { %v1138_v2 = vpack.c.bf16 %v1134_v0, %v1133_v63 }
 0xb5a   :  { %v880_v4 = vpop.permute.xlu0 %879 }
 0xb5b   :  { %1487 = vmatpush3.bf16.msra.mxu0 %v880_v4  ;;  %v1136_v4 = vld [vmem:[%s2464_s13 + $0x18] sm:$0xff] }
 0xb5c   :  { %1500 = vmatprep.subr.bf16.mxu0 %v1939_v1 }
 0xb5e   :  { %1489 = vmatmul.mubr.msk.bf16.vlgmr.msra.gmra.mrb[20].mxu0 %vm331_vm2, %v2378_v5 }
 0xb5f   :  { %1502 = vmatprep.mubr.msk.bf16.mxu0 %vm1940_vm0, %v1939_v1 }
 0xc31   :  { %v919_v13 = vpop.f32.mrb[20].mxu0 }
 0xc32   :  { %v926_v14 = vadd.f32 %v919_v13, %v869_v60  ;;  %v1490_v15 = vpop.f32.mrb[21].mxu0 }
 0xc33   :  { %v922_v16 = vpop.f32.mrb[22].mxu0 }
 0xc34   :  { %v934_v17 = vadd.f32 %v1354_v12, %v926_v14  ;;  %v927_v18 = vadd.f32 %v922_v16, %v872_v62  ;;  %v1491_v19 = vpop.f32.mrb[23].mxu0 }
 0xc36   :  { %v935_v20 = vadd.f32 %v1354_v12, %v927_v18  ;;  %v936_v23 = vmax.f32 %v934_v17, 0.0 }
 0xc38   :  { %v937_v24 = vmax.f32 %v935_v20, 0.0 }
 0xc3a   :  { %v945_v26 = vpack.c.bf16 %v937_v24, %v936_v23 }
 0xc3c   :  { %1497 = vmatmul.mubr.msk.bf16.vlgmr.msra.gmra.mrb[24].mxu1 %vm280_vm1, %v945_v26 }
 0xc3d   :  { %1507 = vmatpush3.bf16.msra.mxu1 %v1050_v25  ;;  %1508 = vmatprep.mubr.msk.bf16.mxu1 %vm1940_vm0, %v1939_v1 }
 0xc3e   :  { %1520 = vmatprep.subr.bf16.mxu1 %v1939_v1 }
 0xc44   :  { %1509 = vmatmul.mubr.msk.bf16.vlgmr.msra.gmra.mrb[28].mxu1 %vm331_vm2, %v1049_v28  ;;  %v1194_v28 = vld [vmem:[%s2467_s16 + $0x18] sm:$0xff] }
 0xc45   :  { %1524 = vmatprep.mubr.msk.bf16.mxu1 %vm1940_vm0, %v1939_v1  ;;  %1521 = vmatpush3.bf16.msra.mxu1 %v1196_v8  ;;  %v1197_v29 = vpack.c.bf16 %v1194_v28, %v1193_v27 }
 0xc46   :  { %1522 = vmatprep.subr.bf16.mxu1 %v1939_v1 }
 0xc49   :  { %1523 = vmatpush3.bf16.msra.mxu1 %v1197_v29 }
 0xd0f   :  { %v985_v30 = vpop.f32.mrb[24].mxu1 }
 0xd10   :  { %v1498_v31 = vpop.f32.mrb[25].mxu1 }
 0xd11   :  { %v988_v32 = vpop.f32.mrb[26].mxu1 }
 0xd12   :  { %v992_v33 = vpack.c.bf16 %v988_v32, %v985_v30  ;;  %v1499_v34 = vpop.f32.mrb[27].mxu1  ;;  %v1190_v32 = vld [vmem:[#allocation25] sm:$0xff] }
 0xd14   :  { %994 = vrot.lane.b32.xlu1 %v992_v33, %s1941_s15 }
 0xd17   :  { %v1095_v41 = vpop.f32.mrb[28].mxu1 }
 0xd18   :  { %v1096_v42 = vadd.f32 %v1358_v37, %v1095_v41  ;;  %v1510_v43 = vpop.f32.mrb[29].mxu1 }
 0xd19   :  { %v1098_v44 = vpop.f32.mrb[30].mxu1 }
 0xd1a   :  { %v1104_v46 = vrot.slane %v1096_v42, %v1103_v39  ;;  %v1113_v47 = vrot.slane %v1096_v42, %v1112_v40  ;;  %v1511_v48 = vpop.f32.mrb[31].mxu1 }
 0xd1c   :  { %v1105_v49 = vmul.f32 %v1104_v46, %v770_v45 }
 0xd1e   :  { %v1106_v50 = vsel %vm280_vm1, %v1105_v49, 0.0  ;;  %v1366_v49 = vld [vmem:[%s2471_s20] ss:$0 sm:$0xff]  ;;  %s2503_s20 = sld [smem:[#allocation41_spill]] }
 0xd1f   :  { %1107 = vadd.xlane.f32.xlu0 %v1106_v50 }
 0xd86   :  { %v995_v51 = vpop.permute.xlu1 %994 }
 0xd87   :  { %1501 = vmatpush3.bf16.msra.mxu0 %v995_v51  ;;  %v1311_v51 = vmul.f32 %v2342_v56, %v1366_v49 }
 0xd88   :  { %1512 = vmatprep.subr.bf16.mxu0 %v1939_v1 }
 0xd8a   :  { %1503 = vmatmul.mubr.msk.bf16.vlgmr.msra.gmra.mrb[24].mxu0 %vm331_vm2, %v2378_v5  ;;  %v1139_v5 = vpack.c.bf16 %v1136_v4, %v1135_v3 }
 0xd8b   :  { %1516 = vmatprep.mubr.msk.bf16.mxu0 %vm1940_vm0, %v1939_v1  ;;  %1513 = vmatpush3.bf16.msra.mxu0 %v1138_v2 }
 0xd8c   :  { %1514 = vmatprep.subr.bf16.mxu0 %v1939_v1 }
 0xd8f   :  { %1515 = vmatpush3.bf16.msra.mxu0 %v1139_v5 }
 0xdac   :  { %v1108_v9 = vpop.xlane.xlu0 %1107 }
 0xdad   :  { %v1109_v11 = vmul.f32 0.17677669, %v1108_v9 }
 0xe5d   :  { %v1031_v53 = vpop.f32.mrb[24].mxu0 }
 0xe5e   :  { %v1037_v54 = vadd.f32 %v1031_v53, %v985_v30  ;;  %v1504_v55 = vpop.f32.mrb[25].mxu0  ;;  %v1360_v30 = vld [vmem:[#allocation23] ss:$0 sm:$0xff] }
 0xe5f   :  { %v1034_v57 = vpop.f32.mrb[26].mxu0 }
 0xe60   :  { %v1044_v58 = vadd.f32 %v1357_v52, %v1037_v54  ;;  %v1505_v59 = vpop.f32.mrb[27].mxu0  ;;  %v1312_v52 = vsel %vm280_vm1, %v1311_v51, 0.0 }
 0xe62   :  { %v1045_v60 = vmax.f32 %v1044_v58, 0.0 }
 0xe64   :  { %v1114_v61 = vmul.f32 %v1113_v47, %v1045_v60 }
 0xe66   :  { %v1115_v62 = vsel %vm280_vm1, %v1114_v61, 0.0 }
 0xe67   :  { %1116 = vadd.xlane.f32.xlu1 %v1115_v62 }
 0xef4   :  { %v1117_v10 = vpop.xlane.xlu1 %1116 }
 0xef5   :  { %v1118_v12 = vmul.f32 0.17677669, %v1117_v10 }
 0xef7   :  { %v1119_v13 = vmax.f32 %v1109_v11, %v1118_v12 }
 0xef9   :  { %v1120_v14 = vsub.f32 %v1109_v11, %v1119_v13  ;;  %v1123_v15 = vsub.f32 %v1118_v12, %v1119_v13 }
 0xefb   :  { %v1121_v16 = vmul.f32 1.442695, %v1120_v14  ;;  %v1124_v17 = vmul.f32 1.442695, %v1123_v15 }
 0xefd   :  { %1558 = vpow2.f32 %v1121_v16 }
 0xefe   :  { %1560 = vpow2.f32 %v1124_v17 }
 0xf07   :  { %v1559_v18 = vpop.eup %1558 }
 0xf08   :  { %v1561_v19 = vpop.eup %1560 }
 0xf09   :  { %v1126_v20 = vadd.f32 %v1561_v19, %v1559_v18 }
 0xf0b   :  { %1562 = vrcp.f32 %v1126_v20 }
 0xf15   :  { %v1563_v21 = vpop.eup %1562 }
 0xf16   :  { %v1130_v22 = vmul.f32 %v1563_v21, %v1561_v19  ;;  %v1128_v23 = vmul.f32 %v1563_v21, %v1559_v18  ;;  %v1365_v19 = vld [vmem:[%s2503_s20] ss:$0 sm:$0xff] }
 0xf18   :  { %v1129_v24 = vmul.f32 %v1128_v23, %v770_v45  ;;  %v1131_v1 = vmul.f32 %v1130_v22, %v1045_v60  ;;  %v1364_v45 = vld [vmem:[%s2469_s18] ss:$0 sm:$0xff] }
 0xf1a   :  { %v1132_v25 = vadd.f32 %v1131_v1, %v1129_v24  ;;  %v1367_v24 = vld [vmem:[#allocation2] ss:$0 sm:$0xff] }
 0xf1c   :  { %v1137_v26 = vpack.c.bf16 %v1132_v25, %v1132_v25 }
 0xf1e   :  { %1517 = vmatmul.mubr.msk.bf16.vlgmr.msra.gmra.mrb[28].mxu0 %vm280_vm1, %v1137_v26 }
 0xff1   :  { %v1184_v31 = vpop.f32.mrb[28].mxu0 }
 0xff2   :  { %v1185_v33 = vadd.f32 %v1360_v30, %v1184_v31  ;;  %v1518_v34 = vpop.f32.mrb[29].mxu0 }
 0xff3   :  { %v1187_v35 = vpop.f32.mrb[30].mxu0 }
 0xff4   :  { %v1195_v36 = vpack.c.bf16 %v1190_v32, %v1185_v33  ;;  %v1519_v37 = vpop.f32.mrb[31].mxu0 }
 0xff6   :  { %1525 = vmatmul.mubr.msk.bf16.vlgmr.msra.gmra.mrb[32].mxu1 %vm280_vm1, %v1195_v36 }
0x10c9   :  { %v1242_v39 = vpop.f32.mrb[32].mxu1 }
0x10ca   :  { %v1243_v40 = vadd.f32 %v1362_v38, %v1242_v39  ;;  %v1526_v41 = vpop.f32.mrb[33].mxu1 }
0x10cb   :  { %v1245_v42 = vpop.f32.mrb[34].mxu1 }
0x10cc   :  { %1564 = vtanh.f32 %v1243_v40  ;;  %v1246_v43 = vadd.f32 %v1362_v38, %v1245_v42  ;;  %v1527_v44 = vpop.f32.mrb[35].mxu1 }
0x10ce   :  { %1566 = vtanh.f32 %v1246_v43 }
0x10d6   :  { %v1565_v46 = vpop.eup %1564 }
0x10d7   :  { %v1258_v47 = vmul.f32 %v1565_v46, %v1364_v45 }
0x10d8   :  { %v1567_v48 = vpop.eup %1566 }
0x10d9   :  { %1260 = vadd.xlane.f32.xlu0 %v1258_v47  ;;  %v1259_v50 = vmul.f32 %v1567_v48, %v1364_v45 }
0x10dd   :  { %1262 = vadd.xlane.f32.xlu0 %v1259_v50 }
0x10e1   :  { %1313 = vadd.xlane.f32.xlu0 %v1312_v52 }
0x1166   :  { %v1261_v53 = vpop.xlane.xlu0 %1260 }
0x1167   :  { %v1264_v54 = vrot.slane %v1261_v53, 4 }
0x1169   :  { %v1265_v55 = vadd.f32 %v1264_v54, %v1261_v53 }
0x116a   :  { %v1263_v57 = vpop.xlane.xlu0 %1262 }
0x116b   :  { %v1266_v58 = vrot.slane %v1265_v55, 2  ;;  %v1272_v59 = vrot.slane %v1263_v57, 4 }
0x116d   :  { %v1267_v60 = vadd.f32 %v1266_v58, %v1265_v55  ;;  %v1273_v61 = vadd.f32 %v1272_v59, %v1263_v57 }
0x116e   :  { %v1314_v23 = vpop.xlane.xlu0 %1313 }
0x116f   :  { %v1268_v62 = vrot.slane %v1267_v60, 1  ;;  %v1274_v63 = vrot.slane %v1273_v61, 2 }
0x1171   :  { %v1275_v0 = vadd.f32 %v1274_v63, %v1273_v61  ;;  %v1269_v2 = vadd.f32 %v1268_v62, %v1267_v60 }
0x1173   :  { %v1276_v3 = vrot.slane %v1275_v0, 1  ;;  %v1271_v5 = vmul.f32 0.125, %v1269_v2 }
0x1175   :  { %v1277_v4 = vadd.f32 %v1276_v3, %v1275_v0 }
0x1177   :  { %v1278_v56 = vmul.f32 0.125, %v1277_v4 }
0x1179   :  { %v1279_v6 = vmax.f32 %v1271_v5, %v1278_v56 }
0x117b   :  { %v1280_v7 = vsub.f32 %v1271_v5, %v1279_v6  ;;  %v1283_v8 = vsub.f32 %v1278_v56, %v1279_v6 }
0x117d   :  { %v1281_v9 = vmul.f32 1.442695, %v1280_v7  ;;  %v1284_v10 = vmul.f32 1.442695, %v1283_v8 }
0x117f   :  { %1568 = vpow2.f32 %v1281_v9 }
0x1180   :  { %1570 = vpow2.f32 %v1284_v10 }
0x1189   :  { %v1569_v11 = vpop.eup %1568 }
0x118a   :  { %v1571_v12 = vpop.eup %1570 }
0x118b   :  { %v1286_v13 = vadd.f32 %v1571_v12, %v1569_v11 }
0x118d   :  { %1572 = vrcp.f32 %v1286_v13 }
0x1197   :  { %v1573_v14 = vpop.eup %1572 }
0x1198   :  { %v1288_v15 = vmul.f32 %v1573_v14, %v1569_v11  ;;  %v1290_v16 = vmul.f32 %v1573_v14, %v1571_v12 }
0x119a   :  { %v1289_v17 = vmul.f32 %v1288_v15, %v1185_v33  ;;  %v1291_v18 = vmul.f32 %v1290_v16, %v1190_v32 }
0x119c   :  { %v1292_v20 = vadd.f32 %v1291_v18, %v1289_v17 }
0x119e   :  { %v1300_v21 = vmul.f32 %v1365_v19, %v1292_v20 }
0x11a0   :  { %v1301_v22 = vsel %vm280_vm1, %v1300_v21, 0.0 }
0x11a1   :  { %1302 = vadd.xlane.f32.xlu1 %v1301_v22 }
0x122e   :  { %v1303_v1 = vpop.xlane.xlu1 %1302 }
0x122f   :  { %v1315_v25 = vadd.f32 %v1314_v23, %v1303_v1 }
0x1231   :  { %v1323_v26 = vadd.f32 %v1367_v24, %v1315_v25 }
0x1233   :  { %1325 = vst.msk [vmem:[%s2504_s8] sm:$0xff] %vm1324_vm3, %v1323_v26 }
0x1234   :  { %1330 = vsyncpa [#allocation4], 1 }
0x1235   :  { %1331 = vsyncpa [#allocation6], 1 }
0x1236   :  { %1332 = vsyncpa [#allocation9], 1 }
0x1237   :  { %1333 = vsyncpa [#allocation12], 1 }
0x1238   :  { %1334 = vsyncpa [#allocation15], 1 }
0x1239   :  { %1335 = vsyncpa [#allocation18], 1 }
0x123a   :  { %1336 = vsyncpa [#allocation21], 1 }
0x123b   :  { %1337 = vsyncpa [#allocation24], 1 }

</bundles_post_ra>
